<compile_context>
chip_gen: v5e
topology: v5e:2x2
jax: 0.10.0
libtpu: 0.0.40
codegen_flags: <defaults>
</compile_context>

<pallas_src>
import numpy as np
import jax
import jax.numpy as jnp
from jax import lax
from jax.experimental import pallas as pl
from jax.experimental.pallas import tpu as pltpu

# ------------------------- small, TPU-friendly config -------------------------
B = 2                     # batch (CFG doubles the prompt batch to 4)
LATENT_C = 4              # unet.config.in_channels
HLAT = 16                 # latent height  = height // vae_scale_factor
WLAT = 16                 # latent width
P = HLAT * WLAT           # flattened latent spatial size (256, lane-dense)
SEQ = 8                   # prompt sequence length
HIDDEN = 32               # prompt embedding dim / proxy-unet hidden dim
TEMB_DIM = 32             # timestep embedding dim
VAE_SCALE_FACTOR = 8      # 2 ** (len(vae.block_out_channels) - 1)
VAE_SCALING_FACTOR = 0.13025
HEIGHT = HLAT * VAE_SCALE_FACTOR
WIDTH = WLAT * VAE_SCALE_FACTOR
NUM_STEPS = 4
GUIDANCE_SCALE = 3.0


# ------------------------------ scheduler glue ---------------------------------
def euler_discrete_schedule(num_inference_steps, num_train_timesteps=1000,
                            beta_start=0.00085, beta_end=0.012):
    """EulerDiscreteScheduler (scaled_linear betas, linspace spacing, eps prediction)."""
    betas = np.linspace(beta_start ** 0.5, beta_end ** 0.5,
                        num_train_timesteps, dtype=np.float64) ** 2
    alphas_cumprod = np.cumprod(1.0 - betas)
    sig = np.sqrt((1.0 - alphas_cumprod) / alphas_cumprod)
    timesteps = np.linspace(0, num_train_timesteps - 1,
                            num_inference_steps, dtype=np.float64)[::-1].copy()
    sigmas = np.interp(timesteps, np.arange(num_train_timesteps), sig)
    sigmas = np.concatenate([sigmas, [0.0]])
    init_noise_sigma = float((sigmas.max() ** 2 + 1.0) ** 0.5)
    return timesteps, sigmas, init_noise_sigma


def sinusoidal_time_embedding(t, dim):
    half = dim // 2
    freqs = np.exp(-np.log(10000.0) * np.arange(half, dtype=np.float64) / half)
    ang = t * freqs
    return jnp.asarray(np.concatenate([np.sin(ang), np.cos(ang)])[None, :],
                       dtype=jnp.float32)                       # (1, TEMB_DIM)


# ----------------------------- pipeline forward ----------------------------------
def emu_visual_generation_forward(prompt_embeds, params, latents_init,
                                  height=HEIGHT, width=WIDTH,
                                  num_inference_steps=NUM_STEPS,
                                  guidance_scale=GUIDANCE_SCALE,
                                  crop_info=(0, 0), original_size=(1024, 1024)):
    do_cfg = guidance_scale > 1.0
    assert do_cfg, "this synthetic pipeline assumes classifier-free guidance"
    bsz = prompt_embeds.shape[0] // 2
    _, seq, hidden = prompt_embeds.shape
    _, c, p = latents_init.shape                                   # channels-first (B, C, P)

    timesteps, sigmas, init_noise_sigma = euler_discrete_schedule(num_inference_steps)
    temb_tbl = jnp.concatenate(
        [sinusoidal_time_embedding(float(t), TEMB_DIM) for t in timesteps], axis=0)  # (S, TEMB)
    time_ids = jnp.asarray([list(original_size) + list(crop_info) + [height, width]],
                           dtype=jnp.float32)                                        # (1, 6)

    # channels-first / pre-stacked inputs and pre-transposed weights (wide dims -> lanes in-kernel)
    prompt_pairs = jnp.concatenate([prompt_embeds[:bsz], prompt_embeds[bsz:]], axis=1)  # (B, 2L, D)
    w_in_t = params["w_in"].T       # (D, C)
    wq_t = params["wq"].T           # (D, D)
    w_out_t = params["w_out"].T     # (C, D)
    w_dec_t = params["w_dec"].T     # (3, C)

    # static scheduler / pipeline scalars baked into the kernel (no SMEM round-trips)
    g = float(guidance_scale)
    inv_vae_scaling = 1.0 / VAE_SCALING_FACTOR
    attn_scale = float(hidden) ** -0.5
    sig = [float(s_) for s_ in sigmas]
    f32 = jnp.float32

    def kernel(lat_ref, prompt_ref, temb_ref, tid_ref,
               w_in_t_ref, w_t_ref, w_tid_ref, w_pool_ref,
               wq_t_ref, wk_ref, wv_ref, w_out_t_ref, w_dec_t_ref,
               img_ref):
        # -------- prologue: step-invariant conditioning (per batch element, once) --------
        prompt2 = prompt_ref[0]                                        # (2L, D) [cond ; uncond]
        wqT = wq_t_ref[...]

        # unet_added_conditions["text_embeds"] = mean(prompt_embeds, dim=1), projected -> (D, 1)
        text_c = jnp.mean(prompt2[0:seq], axis=0, keepdims=True)       # (1, D)
        text_u = jnp.mean(prompt2[seq:], axis=0, keepdims=True)        # (1, D)
        pool_c = lax.dot_general(w_pool_ref[...], text_c, (((0,), (1,)), ((), ())),
                                 preferred_element_type=f32)           # (D, 1)
        pool_u = lax.dot_general(w_pool_ref[...], text_u, (((0,), (1,)), ((), ())),
                                 preferred_element_type=f32)           # (D, 1)
        # timestep embedding + time_ids bias for ALL steps, channels-on-sublanes (D, S)
        step_bias = lax.dot_general(w_t_ref[...], temb_ref[...], (((0,), (1,)), ((), ())),
                                    preferred_element_type=f32)        # (D, S)
        tid_bias = lax.dot_general(w_tid_ref[...], tid_ref[...], (((0,), (1,)), ((), ())),
                                   preferred_element_type=f32)         # (D, 1)
        bias_c = step_bias + tid_bias + pool_c                         # (D, S) cond-branch bias
        bias_u = step_bias + tid_bias + pool_u                         # (D, S) uncond-branch bias
        # CFG-combined hidden bias: g*cond + (1-g)*uncond (the shared xw term has weight g+(1-g)=1)
        h_bias = g * bias_c + (1.0 - g) * bias_u                       # (D, S)

        # cross-attention K for both branches, softmax scale folded in
        k2 = jnp.dot(prompt2, wk_ref[...], preferred_element_type=f32) * attn_scale    # (2L, D)
        # attention-score bias table: k_branch_scaled @ (wq^T @ bias_branch), per step
        qb_c = jnp.dot(wqT, bias_c, preferred_element_type=f32)        # (D, S)
        qb_u = jnp.dot(wqT, bias_u, preferred_element_type=f32)        # (D, S)
        att_bias = jnp.concatenate(
            [jnp.dot(k2[0:seq], qb_c, preferred_element_type=f32),     # (L, S)
             jnp.dot(k2[seq:], qb_u, preferred_element_type=f32)],     # (L, S)
            axis=0)                                                     # (2L, S)
        # cross-attention V^T for both branches with the CFG weights folded in -> (D, 2L)
        v2t = lax.dot_general(wv_ref[...], prompt2, (((0,), (1,)), ((), ())),
                              preferred_element_type=f32)              # (D, 2L)
        branch_scale = jnp.concatenate(
            [jnp.full((1, seq), g, f32), jnp.full((1, seq), 1.0 - g, f32)], axis=1)     # (1, 2L)
        v2t = v2t * branch_scale

        w_inT = w_in_t_ref[...]
        w_outT = w_out_t_ref[...]

        # -------- denoising loop (fully unrolled; latents resident in vregs) --------
        lat = lat_ref[0] * init_noise_sigma                            # (C, P) randn * init_sigma
        for s in range(num_inference_steps):
            sigma, sigma_next = sig[s], sig[s + 1]
            # EulerDiscreteScheduler.scale_model_input: x / sqrt(sigma^2 + 1), applied to (C, P)
            inp_scale = float(1.0 / np.sqrt(sigma * sigma + 1.0))
            xw = jnp.dot(w_inT, lat * inp_scale, preferred_element_type=f32)   # (D, P)
            q = jnp.dot(wqT, xw, preferred_element_type=f32)                   # (D, P)
            att = jnp.dot(k2, q, preferred_element_type=f32) + att_bias[:, s:s + 1]  # (2L, P)
            # per-branch softmax over the L keys (8-sublane reductions), exact normalization
            att_c, att_u = att[0:seq], att[seq:]
            p_c = jnp.exp(att_c - jnp.max(att_c, axis=0, keepdims=True))
            p_c = p_c / jnp.sum(p_c, axis=0, keepdims=True)
            p_u = jnp.exp(att_u - jnp.max(att_u, axis=0, keepdims=True))
            p_u = p_u / jnp.sum(p_u, axis=0, keepdims=True)
            pw = jnp.concatenate([p_c, p_u], axis=0)                           # (2L, P)
            # CFG-weighted attention output for both branches in one matmul
            av = jnp.dot(v2t, pw, preferred_element_type=f32)                  # (D, P)
            # guided noise = w_out^T @ (g*(h_c+av_c) + (1-g)*(h_u+av_u))
            guided = jnp.dot(w_outT, xw + av + h_bias[:, s:s + 1],
                             preferred_element_type=f32)                       # (C, P)
            # EulerDiscreteScheduler.step (epsilon prediction, s_churn=0): derivative == noise
            lat = lat + (sigma_next - sigma) * guided

        # -------- decode at the end (VAE 1x1-conv proxy), lane-dense (3, P) output --------
        z = lat * inv_vae_scaling                                      # 1/scaling_factor * latents
        img = jnp.dot(w_dec_t_ref[...], z, preferred_element_type=f32)         # (3, P)
        img_ref[0] = jnp.clip(img * 0.5 + 0.5, 0.0, 1.0)               # (image/2 + 0.5).clamp(0,1)

    def full_spec(arr):
        nd = arr.ndim
        return pl.BlockSpec(arr.shape, lambda b: (0,) * nd)

    images_cp = pl.pallas_call(
        kernel,
        out_shape=jax.ShapeDtypeStruct((bsz, 3, p), jnp.float32),
        grid=(bsz,),
        in_specs=[
            pl.BlockSpec((1, c, p), lambda b: (b, 0, 0)),              # latents (channels-first)
            pl.BlockSpec((1, 2 * seq, hidden), lambda b: (b, 0, 0)),   # [cond ; uncond] prompts
            full_spec(temb_tbl), full_spec(time_ids),
            full_spec(w_in_t), full_spec(params["w_t"]), full_spec(params["w_tid"]),
            full_spec(params["w_pool"]), full_spec(wq_t), full_spec(params["wk"]),
            full_spec(params["wv"]), full_spec(w_out_t), full_spec(w_dec_t),
        ],
        out_specs=pl.BlockSpec((1, 3, p), lambda b: (b, 0, 0)),
        compiler_params=pltpu.CompilerParams(dimension_semantics=("parallel",)),
        # TODO(synk): on v7x, pltpu.CORE_PARALLEL / pl.core_map would split B across the 2 TCs.
    )(latents_init, prompt_pairs, temb_tbl, time_ids,
      w_in_t, params["w_t"], params["w_tid"], params["w_pool"],
      wq_t, params["wk"], params["wv"], w_out_t, w_dec_t)

    # lane-dense (B, 3, P) -> NHWC (matches decode_latents' permute(0, 2, 3, 1))
    hlat, wlat = height // VAE_SCALE_FACTOR, width // VAE_SCALE_FACTOR
    images = jnp.transpose(images_cp, (0, 2, 1)).reshape(bsz, hlat, wlat, 3)
    # TODO(synk): numpy_to_pil / safety_checker (PIL + CLIP model) not representable in Pallas.
    return images


# ------------------------------ pure-JAX reference --------------------------------
def reference_forward(prompt_embeds, params, latents_init_cp, guidance_scale,
                      height=HEIGHT, width=WIDTH, num_inference_steps=NUM_STEPS,
                      crop_info=(0, 0), original_size=(1024, 1024)):
    bsz = prompt_embeds.shape[0] // 2
    latents = jnp.transpose(latents_init_cp, (0, 2, 1))                # (B, P, C)
    text = jnp.mean(prompt_embeds, axis=1)
    time_ids = jnp.asarray([list(original_size) + list(crop_info) + [height, width]],
                           dtype=jnp.float32)
    timesteps, sigmas, init_noise_sigma = euler_discrete_schedule(num_inference_steps)
    latents = latents * init_noise_sigma
    for i, t in enumerate(timesteps):
        sigma, sigma_next = float(sigmas[i]), float(sigmas[i + 1])
        x = jnp.concatenate([latents, latents], 0) * (1.0 / np.sqrt(sigma * sigma + 1.0))
        temb = sinusoidal_time_embedding(float(t), TEMB_DIM)
        h = (jnp.einsum("npc,cd->npd", x, params["w_in"])
             + (temb @ params["w_t"])[None]
             + (time_ids @ params["w_tid"])[None]
             + (text @ params["w_pool"])[:, None, :])
        q = jnp.einsum("npd,de->npe", h, params["wq"])
        k = jnp.einsum("nld,de->nle", prompt_embeds, params["wk"])
        v = jnp.einsum("nld,de->nle", prompt_embeds, params["wv"])
        s = jnp.einsum("npe,nle->npl", q, k) * (HIDDEN ** -0.5)
        s = s - jnp.max(s, axis=-1, keepdims=True)
        pr = jnp.exp(s)
        pr = pr / jnp.sum(pr, axis=-1, keepdims=True)
        attn = jnp.einsum("npl,nld->npd", pr, v)
        noise = jnp.einsum("npd,dc->npc", h + attn, params["w_out"])
        cond, uncond = noise[:bsz], noise[bsz:]
        guided = uncond + guidance_scale * (cond - uncond)
        pred_orig = latents - sigma * guided
        deriv = (latents - pred_orig) / sigma
        latents = latents + deriv * (sigma_next - sigma)
    z = latents * (1.0 / VAE_SCALING_FACTOR)
    img = jnp.clip(jnp.einsum("npc,ck->npk", z, params["w_dec"]) * 0.5 + 0.5, 0.0, 1.0)
    return img.reshape(bsz, height // VAE_SCALE_FACTOR, width // VAE_SCALE_FACTOR, 3)


# ------------------------------------ params ---------------------------------------
def init_params(key):
    ks = jax.random.split(key, 9)
    w = lambda k, shape, scale=0.02: scale * jax.random.normal(k, shape, jnp.float32)
    return dict(
        w_in=w(ks[0], (LATENT_C, HIDDEN)),
        w_t=w(ks[1], (TEMB_DIM, HIDDEN)),
        w_tid=w(ks[2], (6, HIDDEN), 1e-4),
        w_pool=w(ks[3], (HIDDEN, HIDDEN)),
        wq=w(ks[4], (HIDDEN, HIDDEN)),
        wk=w(ks[5], (HIDDEN, HIDDEN)),
        wv=w(ks[6], (HIDDEN, HIDDEN)),
        w_out=w(ks[7], (HIDDEN, LATENT_C)),
        w_dec=w(ks[8], (LATENT_C, 3), 0.2),
    )


if __name__ == "__main__":
    key = jax.random.PRNGKey(0)
    k_params, k_cond, k_uncond, k_lat = jax.random.split(key, 4)
    params = init_params(k_params)

    # TODO(synk): prompt_embeds normally come from EmuModel.generate_image (33B LLM); synthetic here.
    cond_embeds = jax.random.normal(k_cond, (B, SEQ, HIDDEN), jnp.float32)
    uncond_embeds = jax.random.normal(k_uncond, (B, SEQ, HIDDEN), jnp.float32)
    prompt_embeds = jnp.concatenate([cond_embeds, uncond_embeds], axis=0)   # (2B, L, D) [cond, uncond]

    # torch.randn(shape) with shape (B, C, H, W), flattened over H*W -> channels-first (B, C, P)
    latents_init = jax.random.normal(k_lat, (B, LATENT_C, P), jnp.float32)

    images = emu_visual_generation_forward(prompt_embeds, params, latents_init)
    images = jax.block_until_ready(images)

    ref = jax.block_until_ready(
        reference_forward(prompt_embeds, params, latents_init, GUIDANCE_SCALE))

    assert images.shape == (B, HLAT, WLAT, 3), images.shape
    np.testing.assert_allclose(np.asarray(images), np.asarray(ref), rtol=5e-2, atol=5e-2)
    print("KERNEL_OK")
</pallas_src>

<mosaic_0001>
module attributes {stable_mosaic.version = 11 : i64} {
  func.func @kernel(%arg0: i32, %arg1: memref<1x4x256xf32, #tpu.memory_space<vmem>>, %arg2: memref<1x16x32xf32, #tpu.memory_space<vmem>>, %arg3: memref<4x32xf32, #tpu.memory_space<vmem>>, %arg4: memref<1x6xf32, #tpu.memory_space<vmem>>, %arg5: memref<32x4xf32, #tpu.memory_space<vmem>>, %arg6: memref<32x32xf32, #tpu.memory_space<vmem>>, %arg7: memref<6x32xf32, #tpu.memory_space<vmem>>, %arg8: memref<32x32xf32, #tpu.memory_space<vmem>>, %arg9: memref<32x32xf32, #tpu.memory_space<vmem>>, %arg10: memref<32x32xf32, #tpu.memory_space<vmem>>, %arg11: memref<32x32xf32, #tpu.memory_space<vmem>>, %arg12: memref<4x32xf32, #tpu.memory_space<vmem>>, %arg13: memref<3x4xf32, #tpu.memory_space<vmem>>, %arg14: memref<1x3x256xf32, #tpu.memory_space<vmem>>) attributes {dimension_semantics = [#tpu.dimension_semantics<parallel>], iteration_bounds = array<i64: 2>, scalar_prefetch = 0 : i64, scratch_operands = 0 : i64, tpu.core_type = #tpu.core_type<tc>, window_params = [{transform_indices = @transform_0, window_bounds = array<i64: 1, 4, 256>}, {transform_indices = @transform_1, window_bounds = array<i64: 1, 16, 32>}, {pipeline_mode = #tpu.pipeline_mode<synchronous>, transform_indices = @transform_2, window_bounds = array<i64: 4, 32>}, {pipeline_mode = #tpu.pipeline_mode<synchronous>, transform_indices = @transform_3, window_bounds = array<i64: 1, 6>}, {pipeline_mode = #tpu.pipeline_mode<synchronous>, transform_indices = @transform_4, window_bounds = array<i64: 32, 4>}, {pipeline_mode = #tpu.pipeline_mode<synchronous>, transform_indices = @transform_5, window_bounds = array<i64: 32, 32>}, {pipeline_mode = #tpu.pipeline_mode<synchronous>, transform_indices = @transform_6, window_bounds = array<i64: 6, 32>}, {pipeline_mode = #tpu.pipeline_mode<synchronous>, transform_indices = @transform_7, window_bounds = array<i64: 32, 32>}, {pipeline_mode = #tpu.pipeline_mode<synchronous>, transform_indices = @transform_8, window_bounds = array<i64: 32, 32>}, {pipeline_mode = #tpu.pipeline_mode<synchronous>, transform_indices = @transform_9, window_bounds = array<i64: 32, 32>}, {pipeline_mode = #tpu.pipeline_mode<synchronous>, transform_indices = @transform_10, window_bounds = array<i64: 32, 32>}, {pipeline_mode = #tpu.pipeline_mode<synchronous>, transform_indices = @transform_11, window_bounds = array<i64: 4, 32>}, {pipeline_mode = #tpu.pipeline_mode<synchronous>, transform_indices = @transform_12, window_bounds = array<i64: 3, 4>}, {transform_indices = @transform_13, window_bounds = array<i64: 1, 3, 256>}]} {
    %c0 = arith.constant 0 : index
    %c0_0 = arith.constant 0 : index
    %c0_1 = arith.constant 0 : index
    %0 = vector.load %arg2[%c0, %c0_0, %c0_1] : memref<1x16x32xf32, #tpu.memory_space<vmem>>, vector<1x16x32xf32>
    %1 = vector.shape_cast %0 : vector<1x16x32xf32> to vector<16x32xf32>
    %c0_2 = arith.constant 0 : index
    %c0_3 = arith.constant 0 : index
    %2 = vector.load %arg9[%c0_2, %c0_3] : memref<32x32xf32, #tpu.memory_space<vmem>>, vector<32x32xf32>
    %3 = vector.extract_strided_slice %1 {offsets = [0, 0], sizes = [8, 32], strides = [1, 1]} : vector<16x32xf32> to vector<8x32xf32>
    %cst = arith.constant dense<0.000000e+00> : vector<32xf32>
    %4 = vector.multi_reduction <add>, %3, %cst [0] : vector<8x32xf32> to vector<32xf32>
    %5 = vector.shape_cast %4 : vector<32xf32> to vector<1x32xf32>
    %cst_4 = arith.constant 8.000000e+00 : f32
    %6 = vector.broadcast %cst_4 : f32 to vector<1x32xf32>
    %7 = arith.divf %5, %6 : vector<1x32xf32>
    %8 = vector.extract_strided_slice %1 {offsets = [8, 0], sizes = [8, 32], strides = [1, 1]} : vector<16x32xf32> to vector<8x32xf32>
    %cst_5 = arith.constant dense<0.000000e+00> : vector<32xf32>
    %9 = vector.multi_reduction <add>, %8, %cst_5 [0] : vector<8x32xf32> to vector<32xf32>
    %10 = vector.shape_cast %9 : vector<32xf32> to vector<1x32xf32>
    %cst_6 = arith.constant 8.000000e+00 : f32
    %11 = vector.broadcast %cst_6 : f32 to vector<1x32xf32>
    %12 = arith.divf %10, %11 : vector<1x32xf32>
    %c0_7 = arith.constant 0 : index
    %c0_8 = arith.constant 0 : index
    %13 = vector.load %arg8[%c0_7, %c0_8] : memref<32x32xf32, #tpu.memory_space<vmem>>, vector<32x32xf32>
    %cst_9 = arith.constant dense<0.000000e+00> : vector<32x1xf32>
    %14 = tpu.matmul %13, %7, %cst_9 {dimension_numbers = #tpu.dot_dimension_numbers<[0], [1], [1], [0], [0, 1, 1, 0], [], []>} : vector<32x32xf32>, vector<1x32xf32>, vector<32x1xf32> -> vector<32x1xf32>
    %c0_10 = arith.constant 0 : index
    %c0_11 = arith.constant 0 : index
    %15 = vector.load %arg8[%c0_10, %c0_11] : memref<32x32xf32, #tpu.memory_space<vmem>>, vector<32x32xf32>
    %cst_12 = arith.constant dense<0.000000e+00> : vector<32x1xf32>
    %16 = tpu.matmul %15, %12, %cst_12 {dimension_numbers = #tpu.dot_dimension_numbers<[0], [1], [1], [0], [0, 1, 1, 0], [], []>} : vector<32x32xf32>, vector<1x32xf32>, vector<32x1xf32> -> vector<32x1xf32>
    %c0_13 = arith.constant 0 : index
    %c0_14 = arith.constant 0 : index
    %17 = vector.load %arg6[%c0_13, %c0_14] : memref<32x32xf32, #tpu.memory_space<vmem>>, vector<32x32xf32>
    %c0_15 = arith.constant 0 : index
    %c0_16 = arith.constant 0 : index
    %18 = vector.load %arg3[%c0_15, %c0_16] : memref<4x32xf32, #tpu.memory_space<vmem>>, vector<4x32xf32>
    %cst_17 = arith.constant dense<0.000000e+00> : vector<32x4xf32>
    %19 = tpu.matmul %17, %18, %cst_17 {dimension_numbers = #tpu.dot_dimension_numbers<[0], [1], [1], [0], [0, 1, 1, 0], [], []>} : vector<32x32xf32>, vector<4x32xf32>, vector<32x4xf32> -> vector<32x4xf32>
    %c0_18 = arith.constant 0 : index
    %c0_19 = arith.constant 0 : index
    %20 = vector.load %arg7[%c0_18, %c0_19] : memref<6x32xf32, #tpu.memory_space<vmem>>, vector<6x32xf32>
    %c0_20 = arith.constant 0 : index
    %c0_21 = arith.constant 0 : index
    %21 = vector.load %arg4[%c0_20, %c0_21] : memref<1x6xf32, #tpu.memory_space<vmem>>, vector<1x6xf32>
    %cst_22 = arith.constant dense<0.000000e+00> : vector<32x1xf32>
    %22 = tpu.matmul %20, %21, %cst_22 {dimension_numbers = #tpu.dot_dimension_numbers<[0], [1], [1], [0], [0, 1, 1, 0], [], []>} : vector<6x32xf32>, vector<1x6xf32>, vector<32x1xf32> -> vector<32x1xf32>
    %23 = vector.broadcast %22 : vector<32x1xf32> to vector<32x4xf32>
    %24 = arith.addf %19, %23 : vector<32x4xf32>
    %25 = vector.broadcast %14 : vector<32x1xf32> to vector<32x4xf32>
    %26 = arith.addf %24, %25 : vector<32x4xf32>
    %27 = vector.broadcast %22 : vector<32x1xf32> to vector<32x4xf32>
    %28 = arith.addf %19, %27 : vector<32x4xf32>
    %29 = vector.broadcast %16 : vector<32x1xf32> to vector<32x4xf32>
    %30 = arith.addf %28, %29 : vector<32x4xf32>
    %cst_23 = arith.constant 3.000000e+00 : f32
    %31 = vector.broadcast %cst_23 : f32 to vector<32x4xf32>
    %32 = arith.mulf %31, %26 : vector<32x4xf32>
    %cst_24 = arith.constant -2.000000e+00 : f32
    %33 = vector.broadcast %cst_24 : f32 to vector<32x4xf32>
    %34 = arith.mulf %33, %30 : vector<32x4xf32>
    %35 = arith.addf %32, %34 : vector<32x4xf32>
    %c0_25 = arith.constant 0 : index
    %c0_26 = arith.constant 0 : index
    %36 = vector.load %arg10[%c0_25, %c0_26] : memref<32x32xf32, #tpu.memory_space<vmem>>, vector<32x32xf32>
    %cst_27 = arith.constant dense<0.000000e+00> : vector<16x32xf32>
    %37 = tpu.matmul %1, %36, %cst_27 {dimension_numbers = #tpu.dot_dimension_numbers<[1], [0], [0], [1], [0, 0, 1, 1], [], []>} : vector<16x32xf32>, vector<32x32xf32>, vector<16x32xf32> -> vector<16x32xf32>
    %cst_28 = arith.constant 0.176776692 : f32
    %38 = vector.broadcast %cst_28 : f32 to vector<16x32xf32>
    %39 = arith.mulf %37, %38 : vector<16x32xf32>
    %cst_29 = arith.constant dense<0.000000e+00> : vector<32x4xf32>
    %40 = tpu.matmul %2, %26, %cst_29 {dimension_numbers = #tpu.dot_dimension_numbers<[1], [0], [0], [1], [0, 0, 1, 1], [], []>} : vector<32x32xf32>, vector<32x4xf32>, vector<32x4xf32> -> vector<32x4xf32>
    %cst_30 = arith.constant dense<0.000000e+00> : vector<32x4xf32>
    %41 = tpu.matmul %2, %30, %cst_30 {dimension_numbers = #tpu.dot_dimension_numbers<[1], [0], [0], [1], [0, 0, 1, 1], [], []>} : vector<32x32xf32>, vector<32x4xf32>, vector<32x4xf32> -> vector<32x4xf32>
    %42 = vector.extract_strided_slice %39 {offsets = [0, 0], sizes = [8, 32], strides = [1, 1]} : vector<16x32xf32> to vector<8x32xf32>
    %cst_31 = arith.constant dense<0.000000e+00> : vector<8x4xf32>
    %43 = tpu.matmul %42, %40, %cst_31 {dimension_numbers = #tpu.dot_dimension_numbers<[1], [0], [0], [1], [0, 0, 1, 1], [], []>} : vector<8x32xf32>, vector<32x4xf32>, vector<8x4xf32> -> vector<8x4xf32>
    %44 = vector.extract_strided_slice %39 {offsets = [8, 0], sizes = [8, 32], strides = [1, 1]} : vector<16x32xf32> to vector<8x32xf32>
    %cst_32 = arith.constant dense<0.000000e+00> : vector<8x4xf32>
    %45 = tpu.matmul %44, %41, %cst_32 {dimension_numbers = #tpu.dot_dimension_numbers<[1], [0], [0], [1], [0, 0, 1, 1], [], []>} : vector<8x32xf32>, vector<32x4xf32>, vector<8x4xf32> -> vector<8x4xf32>
    %46 = tpu.concatenate %43, %45 in 0 : vector<8x4xf32>, vector<8x4xf32> -> vector<16x4xf32>
    %c0_33 = arith.constant 0 : index
    %c0_34 = arith.constant 0 : index
    %47 = vector.load %arg11[%c0_33, %c0_34] : memref<32x32xf32, #tpu.memory_space<vmem>>, vector<32x32xf32>
    %cst_35 = arith.constant dense<0.000000e+00> : vector<32x16xf32>
    %48 = tpu.matmul %47, %1, %cst_35 {dimension_numbers = #tpu.dot_dimension_numbers<[0], [1], [1], [0], [0, 1, 1, 0], [], []>} : vector<32x32xf32>, vector<16x32xf32>, vector<32x16xf32> -> vector<32x16xf32>
    %cst_36 = arith.constant 3.000000e+00 : f32
    %49 = vector.broadcast %cst_36 : f32 to vector<1x8xf32>
    %cst_37 = arith.constant -2.000000e+00 : f32
    %50 = vector.broadcast %cst_37 : f32 to vector<1x8xf32>
    %51 = tpu.concatenate %49, %50 in 1 : vector<1x8xf32>, vector<1x8xf32> -> vector<1x16xf32>
    %52 = vector.broadcast %51 : vector<1x16xf32> to vector<32x16xf32>
    %53 = arith.mulf %48, %52 : vector<32x16xf32>
    %c0_38 = arith.constant 0 : index
    %c0_39 = arith.constant 0 : index
    %54 = vector.load %arg5[%c0_38, %c0_39] : memref<32x4xf32, #tpu.memory_space<vmem>>, vector<32x4xf32>
    %c0_40 = arith.constant 0 : index
    %c0_41 = arith.constant 0 : index
    %55 = vector.load %arg12[%c0_40, %c0_41] : memref<4x32xf32, #tpu.memory_space<vmem>>, vector<4x32xf32>
    %c0_42 = arith.constant 0 : index
    %c0_43 = arith.constant 0 : index
    %c0_44 = arith.constant 0 : index
    %56 = vector.load %arg1[%c0_42, %c0_43, %c0_44] : memref<1x4x256xf32, #tpu.memory_space<vmem>>, vector<1x4x256xf32>
    %57 = vector.shape_cast %56 : vector<1x4x256xf32> to vector<4x256xf32>
    %cst_45 = arith.constant 14.6488132 : f32
    %58 = vector.broadcast %cst_45 : f32 to vector<4x256xf32>
    %59 = arith.mulf %57, %58 : vector<4x256xf32>
    %cst_46 = arith.constant 0.0682649165 : f32
    %60 = vector.broadcast %cst_46 : f32 to vector<4x256xf32>
    %61 = arith.mulf %59, %60 : vector<4x256xf32>
    %cst_47 = arith.constant dense<0.000000e+00> : vector<32x256xf32>
    %62 = tpu.matmul %54, %61, %cst_47 {dimension_numbers = #tpu.dot_dimension_numbers<[1], [0], [0], [1], [0, 0, 1, 1], [], []>} : vector<32x4xf32>, vector<4x256xf32>, vector<32x256xf32> -> vector<32x256xf32>
    %cst_48 = arith.constant dense<0.000000e+00> : vector<32x256xf32>
    %63 = tpu.matmul %2, %62, %cst_48 {dimension_numbers = #tpu.dot_dimension_numbers<[1], [0], [0], [1], [0, 0, 1, 1], [], []>} : vector<32x32xf32>, vector<32x256xf32>, vector<32x256xf32> -> vector<32x256xf32>
    %cst_49 = arith.constant dense<0.000000e+00> : vector<16x256xf32>
    %64 = tpu.matmul %39, %63, %cst_49 {dimension_numbers = #tpu.dot_dimension_numbers<[1], [0], [0], [1], [0, 0, 1, 1], [], []>} : vector<16x32xf32>, vector<32x256xf32>, vector<16x256xf32> -> vector<16x256xf32>
    %65 = vector.extract_strided_slice %46 {offsets = [0, 0], sizes = [16, 1], strides = [1, 1]} : vector<16x4xf32> to vector<16x1xf32>
    %66 = vector.broadcast %65 : vector<16x1xf32> to vector<16x256xf32>
    %67 = arith.addf %64, %66 : vector<16x256xf32>
    %68 = vector.extract_strided_slice %67 {offsets = [0, 0], sizes = [8, 256], strides = [1, 1]} : vector<16x256xf32> to vector<8x256xf32>
    %69 = vector.extract_strided_slice %67 {offsets = [8, 0], sizes = [8, 256], strides = [1, 1]} : vector<16x256xf32> to vector<8x256xf32>
    %cst_50 = arith.constant dense<0xFF800000> : vector<256xf32>
    %70 = vector.multi_reduction <maximumf>, %68, %cst_50 [0] : vector<8x256xf32> to vector<256xf32>
    %71 = vector.shape_cast %70 : vector<256xf32> to vector<1x256xf32>
    %72 = vector.broadcast %71 : vector<1x256xf32> to vector<8x256xf32>
    %73 = arith.subf %68, %72 : vector<8x256xf32>
    %74 = math.exp %73 : vector<8x256xf32>
    %cst_51 = arith.constant dense<0.000000e+00> : vector<256xf32>
    %75 = vector.multi_reduction <add>, %74, %cst_51 [0] : vector<8x256xf32> to vector<256xf32>
    %76 = vector.shape_cast %75 : vector<256xf32> to vector<1x256xf32>
    %77 = vector.broadcast %76 : vector<1x256xf32> to vector<8x256xf32>
    %78 = arith.divf %74, %77 : vector<8x256xf32>
    %cst_52 = arith.constant dense<0xFF800000> : vector<256xf32>
    %79 = vector.multi_reduction <maximumf>, %69, %cst_52 [0] : vector<8x256xf32> to vector<256xf32>
    %80 = vector.shape_cast %79 : vector<256xf32> to vector<1x256xf32>
    %81 = vector.broadcast %80 : vector<1x256xf32> to vector<8x256xf32>
    %82 = arith.subf %69, %81 : vector<8x256xf32>
    %83 = math.exp %82 : vector<8x256xf32>
    %cst_53 = arith.constant dense<0.000000e+00> : vector<256xf32>
    %84 = vector.multi_reduction <add>, %83, %cst_53 [0] : vector<8x256xf32> to vector<256xf32>
    %85 = vector.shape_cast %84 : vector<256xf32> to vector<1x256xf32>
    %86 = vector.broadcast %85 : vector<1x256xf32> to vector<8x256xf32>
    %87 = arith.divf %83, %86 : vector<8x256xf32>
    %88 = tpu.concatenate %78, %87 in 0 : vector<8x256xf32>, vector<8x256xf32> -> vector<16x256xf32>
    %cst_54 = arith.constant dense<0.000000e+00> : vector<32x256xf32>
    %89 = tpu.matmul %53, %88, %cst_54 {dimension_numbers = #tpu.dot_dimension_numbers<[1], [0], [0], [1], [0, 0, 1, 1], [], []>} : vector<32x16xf32>, vector<16x256xf32>, vector<32x256xf32> -> vector<32x256xf32>
    %90 = arith.addf %62, %89 : vector<32x256xf32>
    %91 = vector.extract_strided_slice %35 {offsets = [0, 0], sizes = [32, 1], strides = [1, 1]} : vector<32x4xf32> to vector<32x1xf32>
    %92 = vector.broadcast %91 : vector<32x1xf32> to vector<32x256xf32>
    %93 = arith.addf %90, %92 : vector<32x256xf32>
    %cst_55 = arith.constant dense<0.000000e+00> : vector<4x256xf32>
    %94 = tpu.matmul %55, %93, %cst_55 {dimension_numbers = #tpu.dot_dimension_numbers<[1], [0], [0], [1], [0, 0, 1, 1], [], []>} : vector<4x32xf32>, vector<32x256xf32>, vector<4x256xf32> -> vector<4x256xf32>
    %cst_56 = arith.constant -11.6963339 : f32
    %95 = vector.broadcast %cst_56 : f32 to vector<4x256xf32>
    %96 = arith.mulf %95, %94 : vector<4x256xf32>
    %97 = arith.addf %59, %96 : vector<4x256xf32>
    %cst_57 = arith.constant 0.324161172 : f32
    %98 = vector.broadcast %cst_57 : f32 to vector<4x256xf32>
    %99 = arith.mulf %97, %98 : vector<4x256xf32>
    %cst_58 = arith.constant dense<0.000000e+00> : vector<32x256xf32>
    %100 = tpu.matmul %54, %99, %cst_58 {dimension_numbers = #tpu.dot_dimension_numbers<[1], [0], [0], [1], [0, 0, 1, 1], [], []>} : vector<32x4xf32>, vector<4x256xf32>, vector<32x256xf32> -> vector<32x256xf32>
    %cst_59 = arith.constant dense<0.000000e+00> : vector<32x256xf32>
    %101 = tpu.matmul %2, %100, %cst_59 {dimension_numbers = #tpu.dot_dimension_numbers<[1], [0], [0], [1], [0, 0, 1, 1], [], []>} : vector<32x32xf32>, vector<32x256xf32>, vector<32x256xf32> -> vector<32x256xf32>
    %cst_60 = arith.constant dense<0.000000e+00> : vector<16x256xf32>
    %102 = tpu.matmul %39, %101, %cst_60 {dimension_numbers = #tpu.dot_dimension_numbers<[1], [0], [0], [1], [0, 0, 1, 1], [], []>} : vector<16x32xf32>, vector<32x256xf32>, vector<16x256xf32> -> vector<16x256xf32>
    %103 = vector.extract_strided_slice %46 {offsets = [0, 1], sizes = [16, 1], strides = [1, 1]} : vector<16x4xf32> to vector<16x1xf32>
    %104 = vector.broadcast %103 : vector<16x1xf32> to vector<16x256xf32>
    %105 = arith.addf %102, %104 : vector<16x256xf32>
    %106 = vector.extract_strided_slice %105 {offsets = [0, 0], sizes = [8, 256], strides = [1, 1]} : vector<16x256xf32> to vector<8x256xf32>
    %107 = vector.extract_strided_slice %105 {offsets = [8, 0], sizes = [8, 256], strides = [1, 1]} : vector<16x256xf32> to vector<8x256xf32>
    %cst_61 = arith.constant dense<0xFF800000> : vector<256xf32>
    %108 = vector.multi_reduction <maximumf>, %106, %cst_61 [0] : vector<8x256xf32> to vector<256xf32>
    %109 = vector.shape_cast %108 : vector<256xf32> to vector<1x256xf32>
    %110 = vector.broadcast %109 : vector<1x256xf32> to vector<8x256xf32>
    %111 = arith.subf %106, %110 : vector<8x256xf32>
    %112 = math.exp %111 : vector<8x256xf32>
    %cst_62 = arith.constant dense<0.000000e+00> : vector<256xf32>
    %113 = vector.multi_reduction <add>, %112, %cst_62 [0] : vector<8x256xf32> to vector<256xf32>
    %114 = vector.shape_cast %113 : vector<256xf32> to vector<1x256xf32>
    %115 = vector.broadcast %114 : vector<1x256xf32> to vector<8x256xf32>
    %116 = arith.divf %112, %115 : vector<8x256xf32>
    %cst_63 = arith.constant dense<0xFF800000> : vector<256xf32>
    %117 = vector.multi_reduction <maximumf>, %107, %cst_63 [0] : vector<8x256xf32> to vector<256xf32>
    %118 = vector.shape_cast %117 : vector<256xf32> to vector<1x256xf32>
    %119 = vector.broadcast %118 : vector<1x256xf32> to vector<8x256xf32>
    %120 = arith.subf %107, %119 : vector<8x256xf32>
    %121 = math.exp %120 : vector<8x256xf32>
    %cst_64 = arith.constant dense<0.000000e+00> : vector<256xf32>
    %122 = vector.multi_reduction <add>, %121, %cst_64 [0] : vector<8x256xf32> to vector<256xf32>
    %123 = vector.shape_cast %122 : vector<256xf32> to vector<1x256xf32>
    %124 = vector.broadcast %123 : vector<1x256xf32> to vector<8x256xf32>
    %125 = arith.divf %121, %124 : vector<8x256xf32>
    %126 = tpu.concatenate %116, %125 in 0 : vector<8x256xf32>, vector<8x256xf32> -> vector<16x256xf32>
    %cst_65 = arith.constant dense<0.000000e+00> : vector<32x256xf32>
    %127 = tpu.matmul %53, %126, %cst_65 {dimension_numbers = #tpu.dot_dimension_numbers<[1], [0], [0], [1], [0, 0, 1, 1], [], []>} : vector<32x16xf32>, vector<16x256xf32>, vector<32x256xf32> -> vector<32x256xf32>
    %128 = arith.addf %100, %127 : vector<32x256xf32>
    %129 = vector.extract_strided_slice %35 {offsets = [0, 1], sizes = [32, 1], strides = [1, 1]} : vector<32x4xf32> to vector<32x1xf32>
    %130 = vector.broadcast %129 : vector<32x1xf32> to vector<32x256xf32>
    %131 = arith.addf %128, %130 : vector<32x256xf32>
    %cst_66 = arith.constant dense<0.000000e+00> : vector<4x256xf32>
    %132 = tpu.matmul %55, %131, %cst_66 {dimension_numbers = #tpu.dot_dimension_numbers<[1], [0], [0], [1], [0, 0, 1, 1], [], []>} : vector<4x32xf32>, vector<32x256xf32>, vector<4x256xf32> -> vector<4x256xf32>
    %cst_67 = arith.constant -1.98594916 : f32
    %133 = vector.broadcast %cst_67 : f32 to vector<4x256xf32>
    %134 = arith.mulf %133, %132 : vector<4x256xf32>
    %135 = arith.addf %97, %134 : vector<4x256xf32>
    %cst_68 = arith.constant 0.731411039 : f32
    %136 = vector.broadcast %cst_68 : f32 to vector<4x256xf32>
    %137 = arith.mulf %135, %136 : vector<4x256xf32>
    %cst_69 = arith.constant dense<0.000000e+00> : vector<32x256xf32>
    %138 = tpu.matmul %54, %137, %cst_69 {dimension_numbers = #tpu.dot_dimension_numbers<[1], [0], [0], [1], [0, 0, 1, 1], [], []>} : vector<32x4xf32>, vector<4x256xf32>, vector<32x256xf32> -> vector<32x256xf32>
    %cst_70 = arith.constant dense<0.000000e+00> : vector<32x256xf32>
    %139 = tpu.matmul %2, %138, %cst_70 {dimension_numbers = #tpu.dot_dimension_numbers<[1], [0], [0], [1], [0, 0, 1, 1], [], []>} : vector<32x32xf32>, vector<32x256xf32>, vector<32x256xf32> -> vector<32x256xf32>
    %cst_71 = arith.constant dense<0.000000e+00> : vector<16x256xf32>
    %140 = tpu.matmul %39, %139, %cst_71 {dimension_numbers = #tpu.dot_dimension_numbers<[1], [0], [0], [1], [0, 0, 1, 1], [], []>} : vector<16x32xf32>, vector<32x256xf32>, vector<16x256xf32> -> vector<16x256xf32>
    %141 = vector.extract_strided_slice %46 {offsets = [0, 2], sizes = [16, 1], strides = [1, 1]} : vector<16x4xf32> to vector<16x1xf32>
    %142 = vector.broadcast %141 : vector<16x1xf32> to vector<16x256xf32>
    %143 = arith.addf %140, %142 : vector<16x256xf32>
    %144 = vector.extract_strided_slice %143 {offsets = [0, 0], sizes = [8, 256], strides = [1, 1]} : vector<16x256xf32> to vector<8x256xf32>
    %145 = vector.extract_strided_slice %143 {offsets = [8, 0], sizes = [8, 256], strides = [1, 1]} : vector<16x256xf32> to vector<8x256xf32>
    %cst_72 = arith.constant dense<0xFF800000> : vector<256xf32>
    %146 = vector.multi_reduction <maximumf>, %144, %cst_72 [0] : vector<8x256xf32> to vector<256xf32>
    %147 = vector.shape_cast %146 : vector<256xf32> to vector<1x256xf32>
    %148 = vector.broadcast %147 : vector<1x256xf32> to vector<8x256xf32>
    %149 = arith.subf %144, %148 : vector<8x256xf32>
    %150 = math.exp %149 : vector<8x256xf32>
    %cst_73 = arith.constant dense<0.000000e+00> : vector<256xf32>
    %151 = vector.multi_reduction <add>, %150, %cst_73 [0] : vector<8x256xf32> to vector<256xf32>
    %152 = vector.shape_cast %151 : vector<256xf32> to vector<1x256xf32>
    %153 = vector.broadcast %152 : vector<1x256xf32> to vector<8x256xf32>
    %154 = arith.divf %150, %153 : vector<8x256xf32>
    %cst_74 = arith.constant dense<0xFF800000> : vector<256xf32>
    %155 = vector.multi_reduction <maximumf>, %145, %cst_74 [0] : vector<8x256xf32> to vector<256xf32>
    %156 = vector.shape_cast %155 : vector<256xf32> to vector<1x256xf32>
    %157 = vector.broadcast %156 : vector<1x256xf32> to vector<8x256xf32>
    %158 = arith.subf %145, %157 : vector<8x256xf32>
    %159 = math.exp %158 : vector<8x256xf32>
    %cst_75 = arith.constant dense<0.000000e+00> : vector<256xf32>
    %160 = vector.multi_reduction <add>, %159, %cst_75 [0] : vector<8x256xf32> to vector<256xf32>
    %161 = vector.shape_cast %160 : vector<256xf32> to vector<1x256xf32>
    %162 = vector.broadcast %161 : vector<1x256xf32> to vector<8x256xf32>
    %163 = arith.divf %159, %162 : vector<8x256xf32>
    %164 = tpu.concatenate %154, %163 in 0 : vector<8x256xf32>, vector<8x256xf32> -> vector<16x256xf32>
    %cst_76 = arith.constant dense<0.000000e+00> : vector<32x256xf32>
    %165 = tpu.matmul %53, %164, %cst_76 {dimension_numbers = #tpu.dot_dimension_numbers<[1], [0], [0], [1], [0, 0, 1, 1], [], []>} : vector<32x16xf32>, vector<16x256xf32>, vector<32x256xf32> -> vector<32x256xf32>
    %166 = arith.addf %138, %165 : vector<32x256xf32>
    %167 = vector.extract_strided_slice %35 {offsets = [0, 2], sizes = [32, 1], strides = [1, 1]} : vector<32x4xf32> to vector<32x1xf32>
    %168 = vector.broadcast %167 : vector<32x1xf32> to vector<32x256xf32>
    %169 = arith.addf %166, %168 : vector<32x256xf32>
    %cst_77 = arith.constant dense<0.000000e+00> : vector<4x256xf32>
    %170 = tpu.matmul %55, %169, %cst_77 {dimension_numbers = #tpu.dot_dimension_numbers<[1], [0], [0], [1], [0, 0, 1, 1], [], []>} : vector<4x32xf32>, vector<32x256xf32>, vector<4x256xf32> -> vector<4x256xf32>
    %cst_78 = arith.constant -0.903190791 : f32
    %171 = vector.broadcast %cst_78 : f32 to vector<4x256xf32>
    %172 = arith.mulf %171, %170 : vector<4x256xf32>
    %173 = arith.addf %135, %172 : vector<4x256xf32>
    %cst_79 = arith.constant 0.999574899 : f32
    %174 = vector.broadcast %cst_79 : f32 to vector<4x256xf32>
    %175 = arith.mulf %173, %174 : vector<4x256xf32>
    %cst_80 = arith.constant dense<0.000000e+00> : vector<32x256xf32>
    %176 = tpu.matmul %54, %175, %cst_80 {dimension_numbers = #tpu.dot_dimension_numbers<[1], [0], [0], [1], [0, 0, 1, 1], [], []>} : vector<32x4xf32>, vector<4x256xf32>, vector<32x256xf32> -> vector<32x256xf32>
    %cst_81 = arith.constant dense<0.000000e+00> : vector<32x256xf32>
    %177 = tpu.matmul %2, %176, %cst_81 {dimension_numbers = #tpu.dot_dimension_numbers<[1], [0], [0], [1], [0, 0, 1, 1], [], []>} : vector<32x32xf32>, vector<32x256xf32>, vector<32x256xf32> -> vector<32x256xf32>
    %cst_82 = arith.constant dense<0.000000e+00> : vector<16x256xf32>
    %178 = tpu.matmul %39, %177, %cst_82 {dimension_numbers = #tpu.dot_dimension_numbers<[1], [0], [0], [1], [0, 0, 1, 1], [], []>} : vector<16x32xf32>, vector<32x256xf32>, vector<16x256xf32> -> vector<16x256xf32>
    %179 = vector.extract_strided_slice %46 {offsets = [0, 3], sizes = [16, 1], strides = [1, 1]} : vector<16x4xf32> to vector<16x1xf32>
    %180 = vector.broadcast %179 : vector<16x1xf32> to vector<16x256xf32>
    %181 = arith.addf %178, %180 : vector<16x256xf32>
    %182 = vector.extract_strided_slice %181 {offsets = [0, 0], sizes = [8, 256], strides = [1, 1]} : vector<16x256xf32> to vector<8x256xf32>
    %183 = vector.extract_strided_slice %181 {offsets = [8, 0], sizes = [8, 256], strides = [1, 1]} : vector<16x256xf32> to vector<8x256xf32>
    %cst_83 = arith.constant dense<0xFF800000> : vector<256xf32>
    %184 = vector.multi_reduction <maximumf>, %182, %cst_83 [0] : vector<8x256xf32> to vector<256xf32>
    %185 = vector.shape_cast %184 : vector<256xf32> to vector<1x256xf32>
    %186 = vector.broadcast %185 : vector<1x256xf32> to vector<8x256xf32>
    %187 = arith.subf %182, %186 : vector<8x256xf32>
    %188 = math.exp %187 : vector<8x256xf32>
    %cst_84 = arith.constant dense<0.000000e+00> : vector<256xf32>
    %189 = vector.multi_reduction <add>, %188, %cst_84 [0] : vector<8x256xf32> to vector<256xf32>
    %190 = vector.shape_cast %189 : vector<256xf32> to vector<1x256xf32>
    %191 = vector.broadcast %190 : vector<1x256xf32> to vector<8x256xf32>
    %192 = arith.divf %188, %191 : vector<8x256xf32>
    %cst_85 = arith.constant dense<0xFF800000> : vector<256xf32>
    %193 = vector.multi_reduction <maximumf>, %183, %cst_85 [0] : vector<8x256xf32> to vector<256xf32>
    %194 = vector.shape_cast %193 : vector<256xf32> to vector<1x256xf32>
    %195 = vector.broadcast %194 : vector<1x256xf32> to vector<8x256xf32>
    %196 = arith.subf %183, %195 : vector<8x256xf32>
    %197 = math.exp %196 : vector<8x256xf32>
    %cst_86 = arith.constant dense<0.000000e+00> : vector<256xf32>
    %198 = vector.multi_reduction <add>, %197, %cst_86 [0] : vector<8x256xf32> to vector<256xf32>
    %199 = vector.shape_cast %198 : vector<256xf32> to vector<1x256xf32>
    %200 = vector.broadcast %199 : vector<1x256xf32> to vector<8x256xf32>
    %201 = arith.divf %197, %200 : vector<8x256xf32>
    %202 = tpu.concatenate %192, %201 in 0 : vector<8x256xf32>, vector<8x256xf32> -> vector<16x256xf32>
    %cst_87 = arith.constant dense<0.000000e+00> : vector<32x256xf32>
    %203 = tpu.matmul %53, %202, %cst_87 {dimension_numbers = #tpu.dot_dimension_numbers<[1], [0], [0], [1], [0, 0, 1, 1], [], []>} : vector<32x16xf32>, vector<16x256xf32>, vector<32x256xf32> -> vector<32x256xf32>
    %204 = arith.addf %176, %203 : vector<32x256xf32>
    %205 = vector.extract_strided_slice %35 {offsets = [0, 3], sizes = [32, 1], strides = [1, 1]} : vector<32x4xf32> to vector<32x1xf32>
    %206 = vector.broadcast %205 : vector<32x1xf32> to vector<32x256xf32>
    %207 = arith.addf %204, %206 : vector<32x256xf32>
    %cst_88 = arith.constant dense<0.000000e+00> : vector<4x256xf32>
    %208 = tpu.matmul %55, %207, %cst_88 {dimension_numbers = #tpu.dot_dimension_numbers<[1], [0], [0], [1], [0, 0, 1, 1], [], []>} : vector<4x32xf32>, vector<32x256xf32>, vector<4x256xf32> -> vector<4x256xf32>
    %cst_89 = arith.constant -0.0291671585 : f32
    %209 = vector.broadcast %cst_89 : f32 to vector<4x256xf32>
    %210 = arith.mulf %209, %208 : vector<4x256xf32>
    %211 = arith.addf %173, %210 : vector<4x256xf32>
    %cst_90 = arith.constant 7.67754316 : f32
    %212 = vector.broadcast %cst_90 : f32 to vector<4x256xf32>
    %213 = arith.mulf %211, %212 : vector<4x256xf32>
    %c0_91 = arith.constant 0 : index
    %c0_92 = arith.constant 0 : index
    %214 = vector.load %arg13[%c0_91, %c0_92] : memref<3x4xf32, #tpu.memory_space<vmem>>, vector<3x4xf32>
    %cst_93 = arith.constant dense<0.000000e+00> : vector<3x256xf32>
    %215 = tpu.matmul %214, %213, %cst_93 {dimension_numbers = #tpu.dot_dimension_numbers<[1], [0], [0], [1], [0, 0, 1, 1], [], []>} : vector<3x4xf32>, vector<4x256xf32>, vector<3x256xf32> -> vector<3x256xf32>
    %cst_94 = arith.constant 5.000000e-01 : f32
    %216 = vector.broadcast %cst_94 : f32 to vector<3x256xf32>
    %217 = arith.mulf %215, %216 : vector<3x256xf32>
    %cst_95 = arith.constant 5.000000e-01 : f32
    %218 = vector.broadcast %cst_95 : f32 to vector<3x256xf32>
    %219 = arith.addf %217, %218 : vector<3x256xf32>
    %cst_96 = arith.constant 0.000000e+00 : f32
    %cst_97 = arith.constant 1.000000e+00 : f32
    %220 = vector.broadcast %cst_96 : f32 to vector<3x256xf32>
    %221 = arith.maximumf %220, %219 : vector<3x256xf32>
    %222 = vector.broadcast %cst_97 : f32 to vector<3x256xf32>
    %223 = arith.minimumf %222, %221 : vector<3x256xf32>
    %c0_98 = arith.constant 0 : index
    %c0_99 = arith.constant 0 : index
    %c0_100 = arith.constant 0 : index
    %224 = vector.load %arg14[%c0_98, %c0_99, %c0_100] : memref<1x3x256xf32, #tpu.memory_space<vmem>>, vector<1x3x256xf32>
    %225 = vector.shape_cast %224 : vector<1x3x256xf32> to vector<3x256xf32>
    %226 = vector.shape_cast %223 : vector<3x256xf32> to vector<1x3x256xf32>
    tpu.vector_store %arg14[%c0_98, %c0_99, %c0_100], %226 {strides = array<i32>} : memref<1x3x256xf32, #tpu.memory_space<vmem>>, vector<1x3x256xf32>,
    return
  }
  func.func @transform_0(%arg0: i32) -> (i32, i32, i32) {
    %c0_i32 = arith.constant 0 : i32
    %c0_i32_0 = arith.constant 0 : i32
    %c0_i32_1 = arith.constant 0 : i32
    return %arg0, %c0_i32, %c0_i32_0 : i32, i32, i32
  }
  func.func @transform_1(%arg0: i32) -> (i32, i32, i32) {
    %c0_i32 = arith.constant 0 : i32
    %c0_i32_0 = arith.constant 0 : i32
    %c0_i32_1 = arith.constant 0 : i32
    return %arg0, %c0_i32, %c0_i32_0 : i32, i32, i32
  }
  func.func @transform_2(%arg0: i32) -> (i32, i32) {
    %c0_i32 = arith.constant 0 : i32
    %c0_i32_0 = arith.constant 0 : i32
    %c0_i32_1 = arith.constant 0 : i32
    return %c0_i32, %c0_i32_0 : i32, i32
  }
  func.func @transform_3(%arg0: i32) -> (i32, i32) {
    %c0_i32 = arith.constant 0 : i32
    %c0_i32_0 = arith.constant 0 : i32
    %c0_i32_1 = arith.constant 0 : i32
    return %c0_i32, %c0_i32_0 : i32, i32
  }
  func.func @transform_4(%arg0: i32) -> (i32, i32) {
    %c0_i32 = arith.constant 0 : i32
    %c0_i32_0 = arith.constant 0 : i32
    %c0_i32_1 = arith.constant 0 : i32
    return %c0_i32, %c0_i32_0 : i32, i32
  }
  func.func @transform_5(%arg0: i32) -> (i32, i32) {
    %c0_i32 = arith.constant 0 : i32
    %c0_i32_0 = arith.constant 0 : i32
    %c0_i32_1 = arith.constant 0 : i32
    return %c0_i32, %c0_i32_0 : i32, i32
  }
  func.func @transform_6(%arg0: i32) -> (i32, i32) {
    %c0_i32 = arith.constant 0 : i32
    %c0_i32_0 = arith.constant 0 : i32
    %c0_i32_1 = arith.constant 0 : i32
    return %c0_i32, %c0_i32_0 : i32, i32
  }
  func.func @transform_7(%arg0: i32) -> (i32, i32) {
    %c0_i32 = arith.constant 0 : i32
    %c0_i32_0 = arith.constant 0 : i32
    %c0_i32_1 = arith.constant 0 : i32
    return %c0_i32, %c0_i32_0 : i32, i32
  }
  func.func @transform_8(%arg0: i32) -> (i32, i32) {
    %c0_i32 = arith.constant 0 : i32
    %c0_i32_0 = arith.constant 0 : i32
    %c0_i32_1 = arith.constant 0 : i32
    return %c0_i32, %c0_i32_0 : i32, i32
  }
  func.func @transform_9(%arg0: i32) -> (i32, i32) {
    %c0_i32 = arith.constant 0 : i32
    %c0_i32_0 = arith.constant 0 : i32
    %c0_i32_1 = arith.constant 0 : i32
    return %c0_i32, %c0_i32_0 : i32, i32
  }
  func.func @transform_10(%arg0: i32) -> (i32, i32) {
    %c0_i32 = arith.constant 0 : i32
    %c0_i32_0 = arith.constant 0 : i32
    %c0_i32_1 = arith.constant 0 : i32
    return %c0_i32, %c0_i32_0 : i32, i32
  }
  func.func @transform_11(%arg0: i32) -> (i32, i32) {
    %c0_i32 = arith.constant 0 : i32
    %c0_i32_0 = arith.constant 0 : i32
    %c0_i32_1 = arith.constant 0 : i32
    return %c0_i32, %c0_i32_0 : i32, i32
  }
  func.func @transform_12(%arg0: i32) -> (i32, i32) {
    %c0_i32 = arith.constant 0 : i32
    %c0_i32_0 = arith.constant 0 : i32
    %c0_i32_1 = arith.constant 0 : i32
    return %c0_i32, %c0_i32_0 : i32, i32
  }
  func.func @transform_13(%arg0: i32) -> (i32, i32, i32) {
    %c0_i32 = arith.constant 0 : i32
    %c0_i32_0 = arith.constant 0 : i32
    %c0_i32_1 = arith.constant 0 : i32
    return %arg0, %c0_i32, %c0_i32_0 : i32, i32, i32
  }
}

</mosaic_0001>

<bundles_post_ra>
// kernel: tpu_custom_call.1
= control target key start
LH: loop header
LB: loop body
LE: loop exit
PB: predicated region body
PF: predicated region fallthrough
CT: control target
= control target key end

     0   :  { %s4991_s0 = inlined_call_operand.hbm [shape: f32[2,4,256], index: 0, kind: input, shape index: {}]   ;;  %s4992_s1 = inlined_call_operand.vmem [shape: f32[2,16,32], index: 1, kind: input, shape index: {}]   ;;  %s4993_s2 = inlined_call_operand.hbm [shape: f32[4,32], index: 2, kind: input, shape index: {}]   ;;  %s4994_s3 = inlined_call_operand.hbm [shape: f32[1,6], index: 3, kind: input, shape index: {}]   ;;  %s4995_s4 = inlined_call_operand.vmem [shape: f32[32,4], index: 4, kind: input, shape index: {}]   ;;  %s4996_s5 = inlined_call_operand.hbm [shape: f32[32,32], index: 5, kind: input, shape index: {}]   ;;  %s4997_s6 = inlined_call_operand.vmem [shape: f32[6,32], index: 6, kind: input, shape index: {}]   ;;  %s4998_s7 = inlined_call_operand.hbm [shape: f32[32,32], index: 7, kind: input, shape index: {}]   ;;  %s4999_s8 = inlined_call_operand.hbm [shape: f32[32,32], index: 8, kind: input, shape index: {}]   ;;  %s5000_s9 = inlined_call_operand.hbm [shape: f32[32,32], index: 9, kind: input, shape index: {}]   ;;  %s5001_s10 = inlined_call_operand.hbm [shape: f32[32,32], index: 10, kind: input, shape index: {}]   ;;  %s5002_s11 = inlined_call_operand.vmem [shape: f32[4,32], index: 11, kind: input, shape index: {}]   ;;  %s5003_s12 = inlined_call_operand.hbm [shape: f32[3,4], index: 12, kind: input, shape index: {}]   ;;  %s5004_s13 = inlined_call_operand.vmem [shape: f32[2,3,256], index: 13, kind: output, shape index: {}]  }
   0x1   :  { %5005 = sst [smem:[#allocation21_spill]] %s4993_s2 }
   0x2   :  { %5006 = sst [smem:[#allocation22_spill]] %s4994_s3 }
   0x3   :  { %5007 = sst [smem:[#allocation23_spill]] %s4996_s5 }
   0x4   :  { %5008 = sst [smem:[#allocation24_spill]] %s5004_s13 }
   0x5   :  { %18 = vsyncpa [#allocation3], 0 }
   0x6   :  { %20 = vsyncpa [#allocation3 + $0x1], 0 }
   0x7   :  { %21 = vsyncpa [#allocation5], 0 }
   0x8   :  { %22 = vsyncpa [#allocation8], 0 }
   0x9   :  { %23 = vsyncpa [#allocation11], 0 }
   0xa   :  { %24 = vsyncpa [#allocation14], 0  ;;  %s4061_s25 = smov 0   ;;  %s4063_s26 = smov 0  }
   0xb   :  { %s4065_s27 = smov 0   ;;  %s4067_s28 = smov 0  }
   0xc LB: > { %s5009_s2 = sld [smem:[#allocation21_spill]]  ;;  %s4085_s15 = sadd.s32 4294967295, %s3973_s28   ;;  %s3973_s28 = sphi %s4067_s28, %s5046_s28   ;;  %s3969_s27 = sphi %s4065_s27, %s5045_s27   ;;  %s3965_s26 = sphi %s4063_s26, %s5044_s26   ;;  %s3961_s25 = sphi %s4061_s25, %s5043_s25  }
   0xd   : > { %p3238_p0 = scmp.ge.s32.totalorder %s3973_s28, 1  ;;  %p51_p1 = scmp.eq.s32.totalorder %s4085_s15, 0 }
   0xe   : > { %p344_p2 = scmp.lt.s32.totalorder %s3973_s28, 3  ;;  %s3975_s17 = smov [#allocation4]  }
   0xf   : > { %s358_s18 = sshll.u32 %s3975_s17, 4  ;;  %s5011_s5 = sld [smem:[#allocation23_spill]]  ;;  %s359_s18 = int_to_ptr.vmem [resolvable:$true] %s358_s18 }
  0x10   : > { %p4090_p3 = pnand %p3238_p0, %p344_p2  ;;  %s3976_s23 = smov [#allocation7]  }
  0x11   : > { %s384_s24 = sshll.u32 %s3976_s23, 4  ;;  %s3977_s29 = smov 128   ;;  %s385_s24 = int_to_ptr.vmem [resolvable:$true] %s384_s24 }
  0x12   : > { %s356_s14 = sshll.u32 %s5009_s2, 4  ;;  %p3474_p4 = pneg %p4090_p3  ;;  %s357_s14 = int_to_ptr.hbm [resolvable:$true] %s356_s14 }
  0x13   : > { %s3978_s30 = smov 8   ;;  %s413_s20 = sshll.u32 %s4999_s8, 4  ;;  %s414_s20 = int_to_ptr.hbm [resolvable:$true] %s413_s20 }
  0x14   : > { %p4101_p5 = pnand %p3474_p4, %p51_p1  ;;  %s3979_s2 = smov [#allocation10]  }
  0x15   : > { %s382_s21 = sshll.u32 %s5011_s5, 4  ;;  %s415_s5 = sshll.u32 %s3979_s2, 4  ;;  %s383_s21 = int_to_ptr.hbm [resolvable:$true] %s382_s21  ;;  %s416_s5 = int_to_ptr.vmem [resolvable:$true] %s415_s5 }
  0x16   : > { %3477 = dma.hbm_to_vmem [thread:$0]  (!%p4101_p5), %s357_s14, 64, %s359_s18, [#allocation5]  }
  0x17   : > { %3483 = dma.hbm_to_vmem [thread:$0]  (!%p4101_p5), %s383_s21, 512, %s385_s24, [#allocation8], %s3977_s29, %s3977_s29, %s3978_s30  }
  0x18   : > { %s441_s14 = sshll.u32 %s5001_s10, 4  ;;  %s3980_s18 = smov [#allocation13]   ;;  %s442_s14 = int_to_ptr.hbm [resolvable:$true] %s441_s14 }
  0x19   : > { %3489 = dma.hbm_to_vmem [thread:$0]  (!%p4101_p5), %s414_s20, 512, %s416_s5, [#allocation11], %s3977_s29, %s3977_s29, %s3978_s30  }
  0x1a   : > { %s443_s21 = sshll.u32 %s3980_s18, 4  ;;  %s5013_s3 = sld [smem:[#allocation22_spill]]  ;;  %s444_s21 = int_to_ptr.vmem [resolvable:$true] %s443_s21 }
  0x1b   : > { %3495 = dma.hbm_to_vmem [thread:$0]  (!%p4101_p5), %s442_s14, 512, %s444_s21, [#allocation14], %s3977_s29, %s3977_s29, %s3978_s30  }
  0x1c   : > { %s399_s23 = sshll.u32 %s4998_s7, 4  ;;  %s3981_s5 = smov [#allocation6]   ;;  %s400_s23 = int_to_ptr.hbm [resolvable:$true] %s399_s23 }
  0x1d   : > { %s370_s20 = sshll.u32 %s3981_s5, 4  ;;  %s3982_s18 = smov [#allocation9]   ;;  %s371_s20 = int_to_ptr.vmem [resolvable:$true] %s370_s20 }
  0x1e   : > { %s401_s24 = sshll.u32 %s3982_s18, 4  ;;  %s427_s14 = sshll.u32 %s5000_s9, 4  ;;  %s402_s24 = int_to_ptr.vmem [resolvable:$true] %s401_s24  ;;  %s428_s14 = int_to_ptr.hbm [resolvable:$true] %s427_s14 }
  0x1f   : > { %3486 = dma.hbm_to_vmem [thread:$0]  (!%p4101_p5), %s400_s23, 512, %s402_s24, [#allocation8], %s3977_s29, %s3977_s29, %s3978_s30  }
  0x20   : > { %s368_s19 = sshll.u32 %s5013_s3, 4  ;;  %s459_s2 = sshll.u32 %s5003_s12, 4  ;;  %s369_s19 = int_to_ptr.hbm [resolvable:$true] %s368_s19  ;;  %s460_s2 = int_to_ptr.hbm [resolvable:$true] %s459_s2 }
  0x21   : > { %3480 = dma.hbm_to_vmem [thread:$0]  (!%p4101_p5), %s369_s19, 16, %s371_s20, [#allocation5]  }
  0x22   : > { %s3983_s3 = smov [#allocation12]   ;;  %s3984_s23 = smov [#allocation15]  }
  0x23   : > { %s429_s13 = sshll.u32 %s3983_s3, 4  ;;  %s461_s5 = sshll.u32 %s3984_s23, 4  ;;  %s430_s13 = int_to_ptr.vmem [resolvable:$true] %s429_s13  ;;  %s462_s5 = int_to_ptr.vmem [resolvable:$true] %s461_s5 }
  0x24   : > { %3492 = dma.hbm_to_vmem [thread:$0]  (!%p4101_p5), %s428_s14, 512, %s430_s13, [#allocation11], %s3977_s29, %s3977_s29, %s3978_s30  }
  0x25   : > { %3498 = dma.hbm_to_vmem [thread:$0]  (!%p4101_p5), %s460_s2, 64, %s462_s5, [#allocation14]  }
  0x26   : > { %s4155_s20 = sadd.s32 1, %s3973_s28   ;;  %s37_s24 = sadd.s32 1, %s3969_s27 }
  0x27   : > { %s34_s18 = ssub.s32 %s3973_s28, %s4155_s20  ;;  %p44_p7 = scmp.ne.s32.totalorder %s3969_s27, %s3965_s26 }
  0x28   : > { %p35_p6 = scmp.eq.s32.totalorder %s34_s18, 0  ;;  %p45_p8 = scmp.eq.s32.totalorder %s3973_s28, 0 }
  0x29   : > { %p50_p9 = scmp.ne.s32.totalorder %s3965_s26, %s3961_s25  ;;  %p3511_p11 = scmp.lt.s32.totalorder %s3973_s28, 2 }
  0x2a   : > { %s4166_s17 = scalar_select %p35_p6, %s3969_s27, %s37_s24  }
  0x2b   : > { %p4170_p10 = por %p51_p1, %p50_p9  ;;  %s472_s30 = sand.u32 1, %s3969_s27  }
  0x2c   : > { %s3437_s22 = sshll.u32 %s3973_s28, 3  ;;  %p46_p12 = por %p45_p8, %p44_p7 }
  0x2d   : > { %s3248_s14 = sshll.u32 %s472_s30, 3  ;;  %s481_s2 = scalar_lea.hbm %s4991_s0, %s3437_s22 }
  0x2e   : > { %s483_s3 = sshll.u32 %s481_s2, 4  ;;  %s476_s13 = scalar_lea.vmem [#allocation2], %s3248_s14  ;;  %s484_s3 = int_to_ptr.hbm [resolvable:$true] %s483_s3 }
  0x2f   : > { %s485_s23 = sshll.u32 %s476_s13, 4  ;;  %p4180_p13 = pnand %p3511_p11, %p46_p12  ;;  %s486_s23 = int_to_ptr.vmem [resolvable:$true] %s485_s23 }
  0x30   : > { %s473_s5 = scalar_lea.sflag [#allocation3], %s472_s30  ;;  %s3893_s18 = sshra.s32 %s484_s3, 4  ;;  %s3894_s18 = int_to_ptr.hbm [resolvable:$true] %s3893_s18 }
  0x31   : > { %s3895_s28 = scalar_lea.hbm %s3894_s18, 8  ;;  %p3897_p2 = pneg %p4180_p13 }
  0x32   : > { %p3896_p0 = scmp.ne.s32.totalorder %s3894_s18, %s3895_s28  ;;  %s3900_s14 = scalar_lea.hbm %s4991_s0, 16 }
  0x33   : > { %p3901_p6 = scmp.lt.s32.totalorder %s3894_s18, %s4991_s0  ;;  %p3902_p7 = scmp.lt.s32.totalorder %s3900_s14, %s3895_s28 }
  0x34   : > { %p3898_p4 = pnand %p3897_p2, %p3896_p0 }
  0x35   : > { %p3903_p8 = por %p3902_p7, %p3901_p6 }
  0x36   : > { %p3899_p5 = pneg %p3898_p4 }
  0x38   : > { %p3904_p9 = pnand %p3903_p8, %p3899_p5 }
  0x3a   : > { %3907 = shalt.err (!%p3904_p9)
}
  0x3b   : > { %3502 = dma.hbm_to_vmem [thread:$0]  (!%p4180_p13), %s484_s3, 128, %s486_s23, %s473_s5  }
  0x3c   : > { %502 = sbr.rel (%p4090_p3) target bundleno = 4170 (0x104a), region = 72  ;;  %s504_s30 = sand.u32 (!%p4090_p3), 1, %s3965_s26  }
  0x3d   : > { %s4197_s2 = sshll.u32 (!%p4090_p3), %s504_s30, 3  ;;  %s505_s13 = scalar_lea.sflag (!%p4090_p3), [#allocation3], %s504_s30 }
  0x3e   : > { %s508_s24 = scalar_lea.vmem (!%p4090_p3), [#allocation2], %s4197_s2 }
  0x41   : > { %3940 = dma.done.wait (%p4170_p10), %s505_s13, 128  }
  0x42   : > { %3942 = vsyncadd (%p4170_p10), %s505_s13, 4294967168 }
  0x43   : > { %3944 = dma.done.wait (%p51_p1), [#allocation5], 80  }
  0x44   : > { %3946 = vsyncadd (%p51_p1), [#allocation5], 4294967216 }
  0x45   : > { %3948 = dma.done.wait (%p51_p1), [#allocation8], 1024  }
  0x46   : > { %3950 = vsyncadd (%p51_p1), [#allocation8], 4294966272 }
  0x47   : > { %3952 = dma.done.wait (%p51_p1), [#allocation11], 1024  }
  0x48   : > { %3954 = vsyncadd (%p51_p1), [#allocation11], 4294966272 }
  0x49   : > { %3956 = dma.done.wait (%p51_p1), [#allocation14], 576  }
  0x4a   : > { %3958 = vsyncadd (%p51_p1), [#allocation14], 4294966720  ;;  %v786_v0 = vld [vmem:[%s4997_s6] sm:$0x3f]  ;;  %vm820_vm0 = vcmask 48128   ;;  %v750_v4 = vld [vmem:[#allocation7 + $0x8] sm:$0xff] }
  0x4b   : > { %788 = vxpose.xlu0.b32.start.end [1/1] (short) (narrow) %v786_v0, 32  ;;  %v749_v1 = vld [vmem:[#allocation7] sm:$0xff]  ;;  %v787_v2 = vld [vmem:[#allocation6] sm:$0x1]  ;;  %v638_v5 = vld [vmem:[#allocation9 + $0x8] sm:$0xff]  ;;  %p597_p1 = scmp.lt.s32.totalorder %s4085_s15, 1 }
  0x4c   : > { %754 = vxpose.xlu1.b32.start [1/4] (short) (narrow) %v749_v1, 32  ;;  %3275 = vmatpush.xpose.msk.msra.mxu2 %vm820_vm0, %v787_v2  ;;  %v637_v3 = vld [vmem:[#allocation9] sm:$0xff]  ;;  %v751_v6 = vld [vmem:[#allocation7 + $0x10] sm:$0xff]  ;;  %v752_v8 = vld [vmem:[#allocation7 + $0x18] sm:$0xff]  ;;  %v3985_v10 = vmov 8.0   ;;  %vm613_vm1 = vcmask 261120  }
  0x4d   : > { %v639_v7 = vld [vmem:[#allocation9 + $0x10] sm:$0xff]  ;;  %v640_v9 = vld [vmem:[#allocation9 + $0x18] sm:$0xff]  ;;  %s5048_s15 = smov (!%p597_p1, %s4085_s15), 1  ;;  %3578 = vrcp.f32 %v3985_v10  ;;  %v3986_v48 = vmov 0   ;;  %v1140_v0 = vld [vmem:[#allocation13] sm:$0xff]  ;;  %vm1249_vm3 = vcmask 1043456  }
  0x4e   : > { %s3438_s3 = sshll.u32 %s5048_s15, 4  ;;  %v753_v39 = vld [vmem:[#allocation4] sm:$0xf]  ;;  %3569 = vset.pattern.permute.xlu2 %v3986_v48  ;;  %vm1236_vm4 = vcmask 31744   ;;  %vm1217_vm5 = vcmask 64512   ;;  %vm1546_vm14 = vcmask 130048  }
  0x4f   : > { %s601_s5 = scalar_lea.vmem %s4992_s1, %s3438_s3  ;;  %3280 = vmatpush.xpose.msk.msra.mxu3 %vm613_vm1, %v753_v39  ;;  %s3439_s21 = sshll.u32 %s5048_s15, 3 }
  0x50   : > { %v4232_v11 = vld [vmem:[%s601_s5] sm:$0xff]  ;;  %v4236_v18 = vld [vmem:[%s601_s5 + $0x8] sm:$0xff]  ;;  %s5042_s2 = sld [smem:[#allocation24_spill]] }
  0x51   : > { %v614_v12 = vsel %vm613_vm1, %v4232_v11, 0.0  ;;  %v629_v20 = vsel %vm613_vm1, %v4236_v18, 0.0 }
  0x52   : > { %v615_v13 = vrot.slane %v614_v12, 4  ;;  %v630_v22 = vrot.slane %v629_v20, 4 }
  0x53   : > { %v3579_v14 = vpop.eup %3578 }
  0x54   : > { %755 = vxpose.xlu1.b32.cont [2/4] (short) (narrow) %v750_v4, 32  ;;  %v616_v15 = vadd.f32 %v615_v13, %v614_v12  ;;  %v622_v16 = vmul.f32 8.0, %v3579_v14  ;;  %v631_v25 = vadd.f32 %v630_v22, %v629_v20  ;;  %vm626_vm2 = vweird.f32 %v3579_v14  ;;  %v1143_v13 = vld [vmem:[#allocation13 + $0x18] sm:$0xff]  ;;  %v991_v22 = vld [vmem:[#allocation12 + $0x10] sm:$0xff] }
  0x56   : > { %v617_v17 = vrot.slane %v616_v15, 2  ;;  %v623_v19 = vsub.f32 1.0, %v622_v16  ;;  %v632_v28 = vrot.slane %v631_v25, 2  ;;  %s606_s13 = scalar_lea.vmem %s5042_s2, %s3439_s21 }
  0x58   : > { %v618_v21 = vadd.f32 %v617_v17, %v616_v15  ;;  %v624_v23 = vmul.f32 %v3579_v14, %v623_v19  ;;  %v633_v31 = vadd.f32 %v632_v28, %v631_v25 }
  0x5a   : > { %v619_v24 = vrot.slane %v618_v21, 1  ;;  %v625_v26 = vadd.f32 %v3579_v14, %v624_v23  ;;  %v634_v32 = vrot.slane %v633_v31, 1  ;;  %v1229_v23 = vld [vmem:[%s508_s24] sm:$0xff] }
  0x5c   : > { %756 = vxpose.xlu1.b32.cont [3/4] (short) (narrow) %v751_v6, 32  ;;  %v620_v27 = vadd.f32 %v619_v24, %v618_v21  ;;  %v627_v29 = vsel %vm626_vm2, %v3579_v14, %v625_v26  ;;  %v635_v34 = vadd.f32 %v634_v32, %v633_v31  ;;  %v1142_v6 = vld [vmem:[#allocation13 + $0x10] sm:$0xff]  ;;  %v992_v21 = vld [vmem:[#allocation12 + $0x18] sm:$0xff]  ;;  %v4264_v24 = vmul.f32 14.648813, %v1229_v23  ;;  %v990_v32 = vld [vmem:[#allocation12 + $0x8] sm:$0xff] }
  0x5e   : > { %v628_v30 = vmul.f32 %v627_v29, %v620_v27  ;;  %v636_v35 = vmul.f32 %v635_v34, %v627_v29  ;;  %v1231_v28 = vmul.f32 0.06826492, %v4264_v24 }
  0x60   : > { %3265 = vmatpush.xpose.msk.msra.mxu0 %vm613_vm1, %v628_v30  ;;  %3270 = vmatpush.xpose.msk.msra.mxu1 %vm613_vm1, %v636_v35  ;;  %1233 = vst [vmem:[#allocation1] ss:$2 sm:$0xff] %v1231_v28  ;;  %v989_v35 = vld [vmem:[#allocation12] sm:$0xff] }
  0x64   : > { %757 = vxpose.xlu1.b32.end [4/4] (short) (narrow) %v752_v8, 32  ;;  %v3987_v8 = vmov 1   ;;  %1011 = vmatpush.msrb.mxu0 %v992_v21 }
  0x66   : > { %1012 = vmatpush.msrb.mxu0 %v991_v22 }
  0x68   : > { %1013 = vmatpush.msrb.mxu0 %v990_v32 }
  0x6a   : > { %1014 = vmatpush.msrb.mxu0 %v989_v35 }
  0x6b   : > { %641 = vxpose.xlu0.b32.start [1/4] (short) (narrow) %v637_v3, 32  ;;  %v1141_v3 = vld [vmem:[#allocation13 + $0x8] sm:$0xff] }
  0x73   : > { %642 = vxpose.xlu0.b32.cont [2/4] (short) (narrow) %v638_v5, 32 }
  0x7b   : > { %643 = vxpose.xlu0.b32.cont [3/4] (short) (narrow) %v639_v7, 32 }
  0x83   : > { %644 = vxpose.xlu0.b32.end [4/4] (short) (narrow) %v640_v9, 32 }
  0xb7   : > { %3570 = vset.pattern.permute.xlu1 %v3986_v48 }
  0xea   : > { %3571 = vset.pattern.permute.xlu0 %v3986_v48  ;;  %v4285_v48 = vld [vmem:[#allocation10 + $0x8] sm:$0xff] }
  0xef   : > { %v804_v33 = vpop.trf.xlu0 }
  0xf0   : > { %3276 = vmatmul.msk.f32.vlgmr.msra.gmra.mxu2 %vm820_vm0, %v804_v33  ;;  %v770_v40 = vpop.trf.xlu1 }
  0xf1   : > { %3281 = vmatmul.msk.f32.vlgmr.msra.gmra.mxu3 %vm613_vm1, %v770_v40 }
  0xf7   : > { %v805_v36 = vpop.trf.xlu0 }
  0xf8   : > { %3277 = vmatmul.msk.f32.gmra.mxu2 %vm820_vm0, %v805_v36  ;;  %v771_v42 = vpop.trf.xlu1 }
  0xf9   : > { %3282 = vmatmul.msk.f32.gmra.mxu3 %vm613_vm1, %v771_v42 }
  0xff   : > { %v806_v37 = vpop.trf.xlu0 }
 0x100   : > { %3278 = vmatmul.msk.f32.gmra.mxu2 %vm820_vm0, %v806_v37  ;;  %v772_v44 = vpop.trf.xlu1 }
 0x101   : > { %3283 = vmatmul.msk.f32.gmra.mxu3 %vm613_vm1, %v772_v44  ;;  %v1235_v44 = vld.sshfl [vmem:[#allocation1 + $0x8] sm:$0xff pattern:$0x75316420] }
 0x107   : > { %v807_v38 = vpop.trf.xlu0 }
 0x108   : > { %3279 = vmatmul.msk.f32.gmra.mxu2 %vm820_vm0, %v807_v38  ;;  %v773_v46 = vpop.trf.xlu1 }
 0x109   : > { %3284 = vmatmul.msk.f32.gmra.mxu3 %vm613_vm1, %v773_v46 }
 0x10f   : > { %v657_v41 = vpop.trf.xlu0 }
 0x110   : > { %3266 = vmatmul.msk.f32.vlgmr.msra.gmra.mxu0 %vm613_vm1, %v657_v41  ;;  %3271 = vmatmul.msk.f32.vlgmr.msra.gmra.mxu1 %vm613_vm1, %v657_v41  ;;  %v4271_v41 = vld [vmem:[#allocation10] sm:$0xff] }
 0x111   : > { %3297 = vmatpush.xpose.msk.msra.mxu0 %vm613_vm1, %v4236_v18 }
 0x115   : > { %3298 = vmatpush.xpose.msk.msra.mxu0 %vm613_vm1, %v4232_v11 }
 0x117   : > { %v658_v43 = vpop.trf.xlu0 }
 0x118   : > { %3267 = vmatmul.msk.f32.gmra.mxu0 %vm613_vm1, %v658_v43  ;;  %3272 = vmatmul.msk.f32.gmra.mxu1 %vm613_vm1, %v658_v43 }
 0x11f   : > { %v659_v45 = vpop.trf.xlu0 }
 0x120   : > { %3268 = vmatmul.msk.f32.gmra.mxu0 %vm613_vm1, %v659_v45  ;;  %3273 = vmatmul.msk.f32.gmra.mxu1 %vm613_vm1, %v659_v45 }
 0x127   : > { %v660_v47 = vpop.trf.xlu0 }
 0x128   : > { %3269 = vmatmul.msk.f32.gmra.mxu0 %vm613_vm1, %v660_v47  ;;  %3274 = vmatmul.msk.f32.gmra.mxu1 %vm613_vm1, %v660_v47 }
 0x130   : > { %3285 = vmatmul.msk.f32.vlgmr.msrb.gmra.mxu0 %vm613_vm1, %v4232_v11 }
 0x138   : > { %3286 = vmatmul.msk.f32.gmra.mxu0 %vm613_vm1, %v4236_v18  ;;  %v4294_v18 = vld [vmem:[#allocation10 + $0x10] sm:$0xff] }
 0x173   : > { %v853_v49 = vpop.f32.mrf.mxu2 }
 0x174   : > { %v917_v1 = vpop.f32.mrf.mxu3 }
 0x17b   : > { %v856_v50 = vpop.f32.mrf.mxu2 }
 0x17c   : > { %872 = vperm.xlu2 %3569, %v856_v50   ;;  %v920_v4 = vpop.f32.mrf.mxu3 }
 0x183   : > { %v859_v51 = vpop.f32.mrf.mxu2 }
 0x184   : > { %877 = vperm.xlu2 %3569, %v859_v51   ;;  %v923_v14 = vpop.f32.mrf.mxu3 }
 0x18b   : > { %v862_v52 = vpop.f32.mrf.mxu2 }
 0x18c   : > { %882 = vperm.xlu2 %3569, %v862_v52   ;;  %v926_v20 = vpop.f32.mrf.mxu3 }
 0x18d   : > { %v705_v53 = vpop.f32.mrf.mxu0  ;;  %v737_v55 = vpop.f32.mrf.mxu1 }
 0x18e   : > { %931 = vperm.xlu0 %3571, %v705_v53   ;;  %v4300_v53 = vld [vmem:[#allocation10 + $0x18] sm:$0xff] }
 0x194   : > { %867 = vperm.xlu2 %3569, %v853_v49  }
 0x195   : > { %v708_v54 = vpop.f32.mrf.mxu0  ;;  %v740_v57 = vpop.f32.mrf.mxu1 }
 0x196   : > { %3573 = vset.pattern.permute.xlu0 %v3987_v8 }
 0x19c   : > { %936 = vperm.xlu2 %3569, %v708_v54   ;;  %v4309_v54 = vld [vmem:[%s4995_s4] sm:$0xff] }
 0x19d   : > { %v711_v56 = vpop.f32.mrf.mxu0  ;;  %v743_v58 = vpop.f32.mrf.mxu1 }
 0x19e   : > { %941 = vperm.xlu1 %3570, %v711_v56   ;;  %v4325_v56 = vld [vmem:[%s4995_s4 + $0x10] sm:$0xff] }
 0x1a4   : > { %960 = vperm.xlu2 %3569, %v740_v57   ;;  %v4332_v57 = vld [vmem:[%s4995_s4 + $0x18] sm:$0xff] }
 0x1a5   : > { %v714_v59 = vpop.f32.mrf.mxu0  ;;  %v746_v60 = vpop.f32.mrf.mxu1 }
 0x1ac   : > { %965 = vperm.xlu2 %3569, %v743_v58  }
 0x1b4   : > { %946 = vperm.xlu2 %3569, %v714_v59  }
 0x1bc   : > { %970 = vperm.xlu2 %3569, %v746_v60  }
 0x1c4   : > { %955 = vperm.xlu2 %3569, %v737_v55   ;;  %v4318_v55 = vld [vmem:[%s4995_s4 + $0x8] sm:$0xff] }
 0x1d6   : > { %v873_v61 = vpop.permute.xlu2 %872 }
 0x1d7   : > { %v921_v7 = vadd.f32 %v920_v4, %v873_v61  ;;  %v1016_v4 = vpop.f32.mrf.mxu0 }
 0x1de   : > { %v878_v62 = vpop.permute.xlu2 %877 }
 0x1df   : > { %v924_v25 = vadd.f32 %v923_v14, %v878_v62  ;;  %v1234_v14 = vld.sshfl [vmem:[#allocation1] sm:$0xff pattern:$0x75316420] }
 0x1e6   : > { %v883_v63 = vpop.permute.xlu2 %882 }
 0x1e7   : > { %v927_v26 = vadd.f32 %v926_v20, %v883_v63 }
 0x1ea   : > { %1144 = vxpose.xlu2.b32.start [1/4] (short) (narrow) %v1140_v0, 32 }
 0x1ee   : > { %v868_v2 = vpop.permute.xlu2 %867 }
 0x1ef   : > { %v918_v36 = vadd.f32 %v917_v1, %v868_v2 }
 0x1f2   : > { %1145 = vxpose.xlu2.b32.cont [2/4] (short) (narrow) %v1141_v3, 32 }
 0x1f6   : > { %v937_v5 = vpop.permute.xlu2 %936 }
 0x1f7   : > { %v950_v9 = vadd.f32 %v937_v5, %v921_v7  ;;  %v4341_v5 = vmul.f32 0.17677669, %v1016_v4 }
 0x1f9   : > { %v978_v15 = vmul.f32 3.0, %v950_v9 }
 0x1fa   : > { %1146 = vxpose.xlu2.b32.cont [3/4] (short) (narrow) %v1142_v6, 32 }
 0x1fe   : > { %v961_v10 = vpop.permute.xlu2 %960 }
 0x1ff   : > { %v974_v12 = vadd.f32 %v961_v10, %v921_v7 }
 0x200   : > { %v932_v34 = vpop.permute.xlu0 %931 }
 0x201   : > { %v982_v16 = vmul.f32 -2.0, %v974_v12  ;;  %v949_v39 = vadd.f32 %v932_v34, %v918_v36 }
 0x202   : > { %1147 = vxpose.xlu2.b32.end [4/4] (short) (narrow) %v1143_v13, 32 }
 0x203   : > { %v4260_v17 = vadd.f32 %v982_v16, %v978_v15  ;;  %v977_v51 = vmul.f32 3.0, %v949_v39 }
 0x206   : > { %v966_v19 = vpop.permute.xlu2 %965 }
 0x207   : > { %v975_v29 = vadd.f32 %v966_v19, %v924_v25  ;;  %v3988_v19 = vmov 2  }
 0x209   : > { %v983_v37 = vmul.f32 -2.0, %v975_v29 }
 0x20e   : > { %v947_v27 = vpop.permute.xlu2 %946 }
 0x20f   : > { %v952_v30 = vadd.f32 %v947_v27, %v927_v26  ;;  %v3989_v27 = vmov 3  }
 0x210   : > { %v942_v31 = vpop.permute.xlu1 %941 }
 0x211   : > { %v951_v33 = vadd.f32 %v942_v31, %v924_v25  ;;  %1048 = vmatpush.msrb.mxu1 %v952_v30  ;;  %v980_v45 = vmul.f32 3.0, %v952_v30 }
 0x213   : > { %v979_v38 = vmul.f32 3.0, %v951_v33  ;;  %1049 = vmatpush.msrb.mxu1 %v951_v33 }
 0x215   : > { %v4269_v40 = vadd.f32 %v983_v37, %v979_v38  ;;  %1050 = vmatpush.msrb.mxu1 %v950_v9 }
 0x216   : > { %v971_v42 = vpop.permute.xlu2 %970 }
 0x217   : > { %v976_v43 = vadd.f32 %v971_v42, %v927_v26  ;;  %1051 = vmatpush.msrb.mxu1 %v949_v39 }
 0x218   : > { %3287 = vmatmul.msk.f32.vlgmr.msrb.gmra.mxu1 %vm613_vm1, %v4271_v41 }
 0x219   : > { %v984_v46 = vmul.f32 -2.0, %v976_v43  ;;  %1077 = vmatpush.msrb.mxu2 %v976_v43  ;;  %3308 = vmatpush.msk.msra.mxu1 %vm1249_vm3, %v1235_v44 }
 0x21b   : > { %v4280_v47 = vadd.f32 %v984_v46, %v980_v45  ;;  %1078 = vmatpush.msrb.mxu2 %v975_v29 }
 0x21d   : > { %1079 = vmatpush.msrb.mxu2 %v974_v12  ;;  %2082 = vperm.xlu0 %3573, %v4280_v47   ;;  %v1019_v12 = vpop.f32.mrf.mxu0 }
 0x21e   : > { %v956_v49 = vpop.permute.xlu2 %955  ;;  %v4349_v13 = vmul.f32 0.17677669, %v1019_v12 }
 0x21f   : > { %v973_v50 = vadd.f32 %v956_v49, %v918_v36 }
 0x220   : > { %3288 = vmatmul.msk.f32.gmra.mxu1 %vm613_vm1, %v4285_v48 }
 0x221   : > { %v981_v52 = vmul.f32 -2.0, %v973_v50  ;;  %1080 = vmatpush.msrb.mxu2 %v973_v50 }
 0x222   : > { %3291 = vmatmul.msk.f32.vlgmr.msrb.gmra.mxu2 %vm613_vm1, %v4271_v41 }
 0x223   : > { %v4291_v11 = vadd.f32 %v981_v52, %v977_v51 }
 0x225   : > { %2070 = vperm.xlu0 %3573, %v4291_v11  }
 0x228   : > { %3289 = vmatmul.msk.f32.gmra.mxu1 %vm613_vm1, %v4294_v18 }
 0x22a   : > { %3292 = vmatmul.msk.f32.gmra.mxu2 %vm613_vm1, %v4285_v48 }
 0x22d   : > { %3575 = vset.pattern.permute.xlu0 %v3988_v19 }
 0x230   : > { %3290 = vmatmul.msk.f32.gmra.mxu1 %vm613_vm1, %v4300_v53 }
 0x232   : > { %3293 = vmatmul.msk.f32.gmra.mxu2 %vm613_vm1, %v4294_v18 }
 0x238   : > { %3309 = vmatmul.msk.f32.vlgmr.msra.gmra.mxu1 %vm1236_vm4, %v4309_v54 }
 0x23a   : > { %3294 = vmatmul.msk.f32.gmra.mxu2 %vm613_vm1, %v4300_v53 }
 0x240   : > { %3310 = vmatmul.msk.f32.gmra.mxu1 %vm1236_vm4, %v4318_v55 }
 0x248   : > { %3311 = vmatmul.msk.f32.gmra.mxu1 %vm1236_vm4, %v4325_v56 }
 0x250   : > { %3312 = vmatmul.msk.f32.gmra.mxu1 %vm1236_vm4, %v4332_v57 }
 0x26b   : > { %1637 = vperm.xlu2 %3569, %v4269_v40  }
 0x283   : > { %v1160_v58 = vpop.trf.xlu2 }
 0x284   : > { %3299 = vmatmul.msk.f32.vlgmr.msra.gmra.mxu0 %vm613_vm1, %v1160_v58 }
 0x28b   : > { %v1161_v59 = vpop.trf.xlu2 }
 0x28c   : > { %3300 = vmatmul.msk.f32.gmra.mxu0 %vm613_vm1, %v1161_v59 }
 0x293   : > { %v1162_v61 = vpop.trf.xlu2 }
 0x294   : > { %3301 = vmatmul.msk.f32.gmra.mxu0 %vm613_vm1, %v1162_v61 }
 0x295   : > { %v1053_v60 = vpop.f32.mrf.mxu1 }
 0x29b   : > { %v1163_v63 = vpop.trf.xlu2 }
 0x29c   : > { %3302 = vmatmul.msk.f32.gmra.mxu0 %vm613_vm1, %v1163_v63 }
 0x29d   : > { %v1056_v62 = vpop.f32.mrf.mxu1 }
 0x2a5   : > { %v1059_v0 = vpop.f32.mrf.mxu1  ;;  %v1082_v1 = vpop.f32.mrf.mxu2 }
 0x2ad   : > { %v1062_v2 = vpop.f32.mrf.mxu1  ;;  %v1085_v3 = vpop.f32.mrf.mxu2 }
 0x2ae   : > { %1109 = vmatpush.msrb.mxu3 %v1062_v2 }
 0x2b0   : > { %1110 = vmatpush.msrb.mxu3 %v1059_v0 }
 0x2b2   : > { %1111 = vmatpush.msrb.mxu3 %v1056_v62 }
 0x2b4   : > { %1112 = vmatpush.msrb.mxu3 %v1053_v60 }
 0x2b5   : > { %v1088_v6 = vpop.f32.mrf.mxu2  ;;  %v4343_v7 = vpop.f32.mrf.mxu1  ;;  %3295 = vmatmul.msk.f32.vlgmr.msrb.gmra.mxu3 %vm613_vm1, %v4341_v5 }
 0x2bd   : > { %v1091_v9 = vpop.f32.mrf.mxu2  ;;  %v4347_v10 = vpop.f32.mrf.mxu1 }
 0x2be   : > { %1132 = vmatpush.msra.mxu3 %v1091_v9 }
 0x2c0   : > { %1133 = vmatpush.msra.mxu3 %v1088_v6 }
 0x2c2   : > { %1134 = vmatpush.msra.mxu3 %v1085_v3 }
 0x2c4   : > { %1135 = vmatpush.msra.mxu3 %v1082_v1 }
 0x2c5   : > { %v4351_v15 = vpop.f32.mrf.mxu1  ;;  %3296 = vmatmul.msk.f32.vlgmr.msra.gmra.mxu3 %vm613_vm1, %v4349_v13 }
 0x2c6   : > { %3303 = vmatpush.msk.msrb.mxu3 %vm1249_vm3, %v1234_v14 }
 0x2cd   : > { %3304 = vmatmul.msk.f32.vlgmr.msrb.gmra.mxu3 %vm1236_vm4, %v4309_v54  ;;  %v4358_v16 = vpop.f32.mrf.mxu1 }
 0x2ce   : > { %1353 = vmatpush.msrb.mxu0 %v4358_v16 }
 0x2d0   : > { %1354 = vmatpush.msrb.mxu0 %v4351_v15 }
 0x2d2   : > { %1355 = vmatpush.msrb.mxu0 %v4347_v10 }
 0x2d4   : > { %1356 = vmatpush.msrb.mxu0 %v4343_v7 }
 0x2d5   : > { %3305 = vmatmul.msk.f32.gmra.mxu3 %vm1236_vm4, %v4318_v55  ;;  %3317 = vmatmul.msk.f32.vlgmr.msrb.gmra.mxu0 %vm613_vm1, %v4271_v41 }
 0x2dd   : > { %3306 = vmatmul.msk.f32.gmra.mxu3 %vm1236_vm4, %v4325_v56  ;;  %3318 = vmatmul.msk.f32.gmra.mxu0 %vm613_vm1, %v4285_v48 }
 0x2e5   : > { %3307 = vmatmul.msk.f32.gmra.mxu3 %vm1236_vm4, %v4332_v57  ;;  %3319 = vmatmul.msk.f32.gmra.mxu0 %vm613_vm1, %v4294_v18 }
 0x2ed   : > { %3320 = vmatmul.msk.f32.gmra.mxu0 %vm613_vm1, %v4300_v53 }
 0x301   : > { %v4378_v20 = vpop.f32.mrf.mxu0 }
 0x309   : > { %v4380_v21 = vpop.f32.mrf.mxu0 }
 0x311   : > { %v4382_v23 = vpop.f32.mrf.mxu0 }
 0x319   : > { %v4385_v26 = vpop.f32.mrf.mxu0 }
 0x338   : > { %v1114_v22 = vpop.f32.mrf.mxu3 }
 0x339   : > { %2267 = vperm.xlu0 %3575, %v1114_v22  }
 0x341   : > { %2511 = vperm.xlu0 %3575, %v4260_v17  }
 0x348   : > { %v1137_v25 = vpop.f32.mrf.mxu3 }
 0x349   : > { %3576 = vset.pattern.permute.xlu0 %v3989_v27  ;;  %1377 = vperm.xlu1 %3570, %v1137_v25  }
 0x34a   : > { %2708 = vperm.xlu0 %3576, %v1137_v25  }
 0x350   : > { %v4387_v28 = vpop.f32.mrf.mxu3 }
 0x351   : > { %1372 = vperm.xlu1 %3570, %v1114_v22  }
 0x352   : > { %v1358_v29 = vpop.f32.mrf.mxu0  ;;  %2952 = vperm.xlu0 %3576, %v4269_v40  }
 0x358   : > { %v4390_v30 = vpop.f32.mrf.mxu3 }
 0x359   : > { %1642 = vperm.xlu1 %3570, %v4280_v47  }
 0x35a   : > { %v1361_v31 = vpop.f32.mrf.mxu0  ;;  %2944 = vperm.xlu0 %3576, %v4291_v11  }
 0x360   : > { %v4394_v32 = vpop.f32.mrf.mxu3 }
 0x361   : > { %1632 = vperm.xlu1 %3570, %v4260_v17  }
 0x362   : > { %v1364_v33 = vpop.f32.mrf.mxu0 }
 0x368   : > { %v4397_v34 = vpop.f32.mrf.mxu3 }
 0x369   : > { %1627 = vperm.xlu1 %3570, %v4291_v11   ;;  %1324 = vmatpush.msra.mxu2 %v4397_v34 }
 0x36a   : > { %v1367_v35 = vpop.f32.mrf.mxu0 }
 0x36b   : > { %1325 = vmatpush.msra.mxu2 %v4394_v32  ;;  %1415 = vmatpush.msrb.mxu1 %v1367_v35 }
 0x36d   : > { %1326 = vmatpush.msra.mxu2 %v4390_v30  ;;  %1416 = vmatpush.msrb.mxu1 %v1364_v33 }
 0x36f   : > { %1327 = vmatpush.msra.mxu2 %v4387_v28  ;;  %1417 = vmatpush.msrb.mxu1 %v1361_v31 }
 0x370   : > { %3313 = vmatmul.msk.f32.vlgmr.msra.gmra.mxu2 %vm613_vm1, %v4271_v41 }
 0x371   : > { %1418 = vmatpush.msrb.mxu1 %v1358_v29  ;;  %3572 = vset.pattern.permute.xlu1 %v3987_v8 }
 0x372   : > { %3323 = vmatmul.msk.f32.vlgmr.msrb.gmra.mxu1 %vm613_vm1, %v4341_v5  ;;  %1834 = vperm.xlu1 %3572, %v1137_v25  }
 0x378   : > { %3314 = vmatmul.msk.f32.gmra.mxu2 %vm613_vm1, %v4285_v48 }
 0x37a   : > { %3324 = vmatmul.msk.f32.gmra.mxu1 %vm613_vm1, %v4349_v13  ;;  %1830 = vperm.xlu1 %3572, %v1114_v22  }
 0x380   : > { %3315 = vmatmul.msk.f32.gmra.mxu2 %vm613_vm1, %v4294_v18 }
 0x382   : > { %2078 = vperm.xlu1 %3572, %v4269_v40  }
 0x388   : > { %3316 = vmatmul.msk.f32.gmra.mxu2 %vm613_vm1, %v4300_v53 }
 0x38a   : > { %2074 = vperm.xlu1 %3572, %v4260_v17  }
 0x392   : > { %3574 = vset.pattern.permute.xlu1 %v3988_v19 }
 0x393   : > { %2271 = vperm.xlu1 %3574, %v1137_v25  }
 0x39b   : > { %2519 = vperm.xlu1 %3574, %v4280_v47  }
 0x3a3   : > { %2515 = vperm.xlu1 %3574, %v4269_v40  }
 0x3ab   : > { %2507 = vperm.xlu1 %3574, %v4291_v11  }
 0x3b3   : > { %3577 = vset.pattern.permute.xlu1 %v3989_v27 }
 0x3b4   : > { %2704 = vperm.xlu1 %3577, %v1114_v22  }
 0x3bb   : > { %v4424_v8 = vpop.permute.xlu1 %1377 }
 0x3bc   : > { %2956 = vperm.xlu1 %3577, %v4280_v47  }
 0x3c3   : > { %v4426_v36 = vpop.permute.xlu1 %1372 }
 0x3c4   : > { %2948 = vperm.xlu1 %3577, %v4260_v17  }
 0x3ef   : > { %v1420_v37 = vpop.f32.mrf.mxu1 }
 0x3f0   : > { %v1421_v38 = vadd.f32 %v1420_v37, %v4426_v36 }
 0x3f2   : > { %v1432_v39 = vrot.slane %v1421_v38, 4 }
 0x3f3   : > { %v1329_v42 = vpop.f32.mrf.mxu2 }
 0x3f4   : > { %v1433_v43 = vmax.f32 %v1421_v38, %v1432_v39 }
 0x3f6   : > { %v1434_v44 = vrot.slane %v1433_v43, 2 }
 0x3f7   : > { %v1423_v40 = vpop.f32.mrf.mxu1 }
 0x3f8   : > { %v1435_v45 = vmax.f32 %v1433_v43, %v1434_v44  ;;  %v1424_v46 = vadd.f32 %v1423_v40, %v4424_v8 }
 0x3fa   : > { %v1436_v49 = vrot.slane %v1435_v45, 1  ;;  %v1492_v50 = vrot.slane %v1424_v46, 4 }
 0x3fb   : > { %v1332_v47 = vpop.f32.mrf.mxu2 }
 0x3fc   : > { %v1437_v51 = vmax.f32 %v1435_v45, %v1436_v49  ;;  %v1493_v17 = vmax.f32 %v1424_v46, %v1492_v50 }
 0x3fe   : > { %v1439_v52 = vsub.f32 %v1421_v38, %v1437_v51  ;;  %v1494_v11 = vrot.slane %v1493_v17, 2  ;;  %v3990_v51 = vmov -2.0  }
 0x400   : > { %v1442_v58 = vmul.f32 1.442695, %v1439_v52  ;;  %v1495_v59 = vmax.f32 %v1493_v17, %v1494_v11  ;;  %v1218_v17 = vsel %vm1217_vm5, 3.0, %v3990_v51 }
 0x402   : > { %3580 = vpow2.f32 %v1442_v58  ;;  %v1496_v60 = vrot.slane %v1495_v59, 1 }
 0x403   : > { %v1335_v61 = vpop.f32.mrf.mxu2 }
 0x404   : > { %v1497_v62 = vmax.f32 %v1495_v59, %v1496_v60 }
 0x406   : > { %v1499_v63 = vsub.f32 %v1424_v46, %v1497_v62 }
 0x408   : > { %v3581_v0 = vpop.eup %3580  ;;  %v1502_v1 = vmul.f32 1.442695, %v1499_v63 }
 0x409   : > { %v1450_v2 = vrot.slane %v3581_v0, 4 }
 0x40a   : > { %3582 = vpow2.f32 %v1502_v1 }
 0x40b   : > { %v1451_v3 = vadd.f32 %v3581_v0, %v1450_v2  ;;  %v1338_v4 = vpop.f32.mrf.mxu2 }
 0x40c   : > { %1392 = vmatpush.msra.mxu3 %v1338_v4 }
 0x40d   : > { %v1452_v6 = vrot.slane %v1451_v3, 2 }
 0x40e   : > { %1393 = vmatpush.msra.mxu3 %v1335_v61  ;;  %v1219_v61 = vperm.slane %v1218_v17, 0 }
 0x40f   : > { %v1453_v9 = vadd.f32 %v1452_v6, %v1451_v3 }
 0x410   : > { %v3583_v12 = vpop.eup %3582  ;;  %1394 = vmatpush.msra.mxu3 %v1332_v47  ;;  %v4435_v3 = vmul.f32 %v1219_v61, %v4378_v20  ;;  %v4440_v4 = vmul.f32 %v1219_v61, %v4380_v21  ;;  %v4445_v6 = vmul.f32 %v1219_v61, %v4382_v23 }
 0x411   : > { %v1510_v14 = vrot.slane %v3583_v12, 4  ;;  %v1454_v19 = vrot.slane %v1453_v9, 1 }
 0x412   : > { %1395 = vmatpush.msra.mxu3 %v1329_v42 }
 0x413   : > { %v1511_v22 = vadd.f32 %v3583_v12, %v1510_v14  ;;  %3321 = vmatmul.msk.f32.vlgmr.msra.gmra.mxu3 %vm613_vm1, %v4341_v5  ;;  %v1455_v25 = vadd.f32 %v1454_v19, %v1453_v9 }
 0x415   : > { %v1512_v27 = vrot.slane %v1511_v22, 2  ;;  %3584 = vrcp.f32 %v1455_v25  ;;  %vm1476_vm7 = vweird.f32 %v1455_v25  ;;  %v1482_v46 = vand.u32 2147483648, %v1455_v25 }
 0x416   : > { %v1480_v47 = vand.u32 2147483647, %v1455_v25 }
 0x417   : > { %v1513_v29 = vadd.f32 %v1512_v27, %v1511_v22  ;;  %v1483_v59 = vor.u32 1.1754944e-38, %v1482_v46 }
 0x418   : > { %vm1481_vm13 = vcmp.eq.f32.partialorder %v1480_v47, 8.507059e+37 }
 0x419   : > { %v1514_v31 = vrot.slane %v1513_v29, 1 }
 0x41b   : > { %v3585_v33 = vpop.eup %3584  ;;  %3322 = vmatmul.msk.f32.gmra.mxu3 %vm613_vm1, %v4349_v13  ;;  %v1515_v35 = vadd.f32 %v1514_v31, %v1513_v29 }
 0x41c   : > { %v1472_v37 = vmul.f32 %v3585_v33, %v1455_v25  ;;  %vm1477_vm6 = vweird.f32 %v3585_v33 }
 0x41d   : > { %3586 = vrcp.f32 %v1515_v35  ;;  %v1542_v45 = vand.u32 2147483648, %v1515_v35  ;;  %v1540_v50 = vand.u32 2147483647, %v1515_v35  ;;  %vm1478_vm9 = vmor %vm1476_vm7, %vm1477_vm6  ;;  %vm1536_vm10 = vweird.f32 %v1515_v35 }
 0x41e   : > { %v1473_v38 = vsub.f32 1.0, %v1472_v37 }
 0x41f   : > { %v1543_v58 = vor.u32 1.1754944e-38, %v1542_v45  ;;  %vm1541_vm12 = vcmp.eq.f32.partialorder %v1540_v50, 8.507059e+37 }
 0x420   : > { %v1474_v39 = vmul.f32 %v3585_v33, %v1473_v38 }
 0x422   : > { %v1475_v40 = vadd.f32 %v3585_v33, %v1474_v39 }
 0x423   : > { %v3587_v43 = vpop.eup %3586 }
 0x424   : > { %v1532_v42 = vmul.f32 %v3587_v43, %v1515_v35  ;;  %vm1537_vm8 = vweird.f32 %v3587_v43  ;;  %v1479_v11 = vsel %vm1478_vm9, %v3585_v33, %v1475_v40 }
 0x425   : > { %vm1538_vm11 = vmor %vm1536_vm10, %vm1537_vm8  ;;  %v1484_v63 = vsel %vm1481_vm13, %v1483_v59, %v1479_v11 }
 0x426   : > { %v1533_v44 = vsub.f32 1.0, %v1532_v42  ;;  %v1485_v2 = vmul.f32 %v3581_v0, %v1484_v63  ;;  %v4450_v0 = vmul.f32 %v1219_v61, %v4385_v26  ;;  %v4460_v61 = vpop.permute.xlu1 %1642 }
 0x428   : > { %v1534_v49 = vmul.f32 %v3587_v43, %v1533_v44 }
 0x42a   : > { %v1535_v52 = vadd.f32 %v3587_v43, %v1534_v49 }
 0x42c   : > { %v1539_v60 = vsel %vm1538_vm11, %v3587_v43, %v1535_v52 }
 0x42d   : > { %v1544_v62 = vsel %vm1541_vm12, %v1543_v58, %v1539_v60 }
 0x42e   : > { %v1545_v1 = vmul.f32 %v3583_v12, %v1544_v62 }
 0x430   : > { %1602 = vmatpush.msrb.mxu3 %v1545_v1 }
 0x432   : > { %1603 = vmatpush.msrb.mxu3 %v1485_v2 }
 0x433   : > { %3329 = vmatmul.msk.f32.vlgmr.msrb.gmra.mxu3 %vm1546_vm14, %v4435_v3 }
 0x43b   : > { %3330 = vmatmul.msk.f32.gmra.mxu3 %vm1546_vm14, %v4440_v4 }
 0x443   : > { %3331 = vmatmul.msk.f32.gmra.mxu3 %vm1546_vm14, %v4445_v6 }
 0x44b   : > { %3332 = vmatmul.msk.f32.gmra.mxu3 %vm1546_vm14, %v4450_v0 }
 0x496   : > { %v1397_v20 = vpop.f32.mrf.mxu3 }
 0x497   : > { %v1398_v9 = vadd.f32 %v1397_v20, %v4426_v36 }
 0x499   : > { %v1426_v21 = vrot.slane %v1398_v9, 4 }
 0x49b   : > { %v1427_v12 = vmax.f32 %v1398_v9, %v1426_v21 }
 0x49d   : > { %v1428_v14 = vrot.slane %v1427_v12, 2 }
 0x49e   : > { %v1400_v19 = vpop.f32.mrf.mxu3 }
 0x49f   : > { %v1429_v22 = vmax.f32 %v1427_v12, %v1428_v14  ;;  %v1401_v23 = vadd.f32 %v1400_v19, %v4424_v8  ;;  %v1633_v12 = vpop.permute.xlu1 %1632 }
 0x4a1   : > { %v1430_v25 = vrot.slane %v1429_v22, 1  ;;  %v1486_v27 = vrot.slane %v1401_v23, 4 }
 0x4a3   : > { %v1431_v29 = vmax.f32 %v1429_v22, %v1430_v25  ;;  %v1487_v31 = vmax.f32 %v1401_v23, %v1486_v27 }
 0x4a5   : > { %v1438_v33 = vsub.f32 %v1398_v9, %v1431_v29  ;;  %v1488_v26 = vrot.slane %v1487_v31, 2 }
 0x4a7   : > { %v1440_v35 = vmul.f32 1.442695, %v1438_v33  ;;  %v1489_v37 = vmax.f32 %v1487_v31, %v1488_v26 }
 0x4a9   : > { %3588 = vpow2.f32 %v1440_v35  ;;  %v1490_v38 = vrot.slane %v1489_v37, 1 }
 0x4ab   : > { %v1491_v39 = vmax.f32 %v1489_v37, %v1490_v38 }
 0x4ad   : > { %v1498_v43 = vsub.f32 %v1401_v23, %v1491_v39 }
 0x4af   : > { %v4456_v36 = vpop.eup %3588  ;;  %v1500_v42 = vmul.f32 1.442695, %v1498_v43 }
 0x4b0   : > { %v1444_v44 = vrot.slane %v4456_v36, 4 }
 0x4b1   : > { %3590 = vpow2.f32 %v1500_v42  ;;  %v1638_v42 = vpop.permute.xlu2 %1637 }
 0x4b2   : > { %v1445_v8 = vadd.f32 %v4456_v36, %v1444_v44 }
 0x4b4   : > { %v1446_v40 = vrot.slane %v1445_v8, 2 }
 0x4b6   : > { %v1605_v45 = vpop.f32.mrf.mxu3  ;;  %v1447_v46 = vadd.f32 %v1446_v40, %v1445_v8 }
 0x4b7   : > { %v3591_v49 = vpop.eup %3590 }
 0x4b8   : > { %v1504_v50 = vrot.slane %v3591_v49, 4  ;;  %v1448_v47 = vrot.slane %v1447_v46, 1 }
 0x4ba   : > { %v1505_v51 = vadd.f32 %v3591_v49, %v1504_v50  ;;  %v1449_v17 = vadd.f32 %v1448_v47, %v1447_v46 }
 0x4bc   : > { %v1506_v52 = vrot.slane %v1505_v51, 2  ;;  %3592 = vrcp.f32 %v1449_v17  ;;  %vm1461_vm15 = vweird.f32 %v1449_v17  ;;  %v1465_v27 = vand.u32 2147483647, %v1449_v17 }
 0x4bd   : > { %v1467_v29 = vand.u32 2147483648, %v1449_v17 }
 0x4be   : > { %v1507_v11 = vadd.f32 %v1506_v52, %v1505_v51  ;;  %v1608_v58 = vpop.f32.mrf.mxu3  ;;  %vm1466_vm9 = vcmp.eq.f32.partialorder %v1465_v27, 8.507059e+37  ;;  %v1628_v51 = vpop.permute.xlu1 %1627 }
 0x4bf   : > { %v1620_v35 = vadd.f32 %v1608_v58, %v4347_v10  ;;  %v1468_v44 = vor.u32 1.1754944e-38, %v1467_v29 }
 0x4c0   : > { %v1508_v59 = vrot.slane %v1507_v11, 1 }
 0x4c1   : > { %v1648_v50 = vadd.f32 %v1633_v12, %v1620_v35 }
 0x4c2   : > { %v3593_v60 = vpop.eup %3592  ;;  %v1509_v62 = vadd.f32 %v1508_v59, %v1507_v11 }
 0x4c3   : > { %v1457_v63 = vmul.f32 %v3593_v60, %v1449_v17  ;;  %vm1462_vm0 = vweird.f32 %v3593_v60 }
 0x4c4   : > { %3594 = vrcp.f32 %v1509_v62  ;;  %v1525_v23 = vand.u32 2147483647, %v1509_v62  ;;  %v1527_v25 = vand.u32 2147483648, %v1509_v62  ;;  %vm4465_vm5 = vmor %vm1461_vm15, %vm1462_vm0  ;;  %vm1521_vm6 = vweird.f32 %v1509_v62 }
 0x4c5   : > { %v1458_v1 = vsub.f32 1.0, %v1457_v63 }
 0x4c6   : > { %v1611_v2 = vpop.f32.mrf.mxu3  ;;  %vm1526_vm8 = vcmp.eq.f32.partialorder %v1525_v23, 8.507059e+37 }
 0x4c7   : > { %v1459_v20 = vmul.f32 %v3593_v60, %v1458_v1  ;;  %v1622_v31 = vadd.f32 %v1611_v2, %v4351_v15  ;;  %v1618_v15 = vadd.f32 %v1605_v45, %v4343_v7  ;;  %v4485_v45 = vld [vmem:[%s5002_s11] sm:$0xf] }
 0x4c9   : > { %v1460_v19 = vadd.f32 %v3593_v60, %v1459_v20  ;;  %v1650_v8 = vadd.f32 %v1638_v42, %v1622_v31  ;;  %v1646_v17 = vadd.f32 %v1628_v51, %v1618_v15 }
 0x4ca   : > { %v3595_v9 = vpop.eup %3594 }
 0x4cb   : > { %v1517_v21 = vmul.f32 %v3595_v9, %v1509_v62  ;;  %vm1522_vm2 = vweird.f32 %v3595_v9  ;;  %v1464_v43 = vsel %vm4465_vm5, %v3593_v60, %v1460_v19 }
 0x4cc   : > { %vm1523_vm7 = vmor %vm1521_vm6, %vm1522_vm2  ;;  %v1469_v46 = vsel %vm1466_vm9, %v1468_v44, %v1464_v43 }
 0x4cd   : > { %v1518_v14 = vsub.f32 1.0, %v1517_v21  ;;  %v1470_v52 = vmul.f32 %v4456_v36, %v1469_v46 }
 0x4ce   : > { %v1614_v22 = vpop.f32.mrf.mxu3 }
 0x4cf   : > { %v1624_v33 = vadd.f32 %v1614_v22, %v4358_v16  ;;  %v1519_v26 = vmul.f32 %v3595_v9, %v1518_v14  ;;  %v1528_v16 = vor.u32 1.1754944e-38, %v1527_v25 }
 0x4d1   : > { %v1652_v38 = vadd.f32 %v4460_v61, %v1624_v33  ;;  %v1520_v39 = vadd.f32 %v3595_v9, %v1519_v26 }
 0x4d3   : > { %1688 = vmatpush.msra.mxu1 %v1652_v38  ;;  %v1524_v10 = vsel %vm1523_vm7, %v3595_v9, %v1520_v39 }
 0x4d4   : > { %v1529_v40 = vsel %vm1526_vm8, %v1528_v16, %v1524_v10 }
 0x4d5   : > { %1689 = vmatpush.msra.mxu1 %v1650_v8  ;;  %v1530_v47 = vmul.f32 %v3591_v49, %v1529_v40 }
 0x4d7   : > { %1573 = vmatpush.msrb.mxu2 %v1530_v47  ;;  %1690 = vmatpush.msra.mxu1 %v1648_v50 }
 0x4d9   : > { %1574 = vmatpush.msrb.mxu2 %v1470_v52  ;;  %1691 = vmatpush.msra.mxu1 %v1646_v17 }
 0x4da   : > { %3325 = vmatmul.msk.f32.vlgmr.msrb.gmra.mxu2 %vm1546_vm14, %v4435_v3  ;;  %3334 = vmatmul.msk.f32.vlgmr.msra.gmra.mxu1 %vm613_vm1, %v4485_v45 }
 0x4e2   : > { %3326 = vmatmul.msk.f32.gmra.mxu2 %vm1546_vm14, %v4440_v4 }
 0x4ea   : > { %3327 = vmatmul.msk.f32.gmra.mxu2 %vm1546_vm14, %v4445_v6 }
 0x4f2   : > { %3328 = vmatmul.msk.f32.gmra.mxu2 %vm1546_vm14, %v4450_v0 }
 0x557   : > { %v1693_v9 = vpop.f32.mrf.mxu1 }
 0x55d   : > { %v1576_v7 = vpop.f32.mrf.mxu2 }
 0x55e   : > { %v1617_v63 = vadd.f32 %v1576_v7, %v4387_v28 }
 0x560   : > { %v1645_v20 = vadd.f32 %v1628_v51, %v1617_v63 }
 0x565   : > { %v1579_v36 = vpop.f32.mrf.mxu2 }
 0x566   : > { %v1619_v60 = vadd.f32 %v1579_v36, %v4390_v30 }
 0x568   : > { %v1647_v2 = vadd.f32 %v1633_v12, %v1619_v60 }
 0x56d   : > { %v1582_v49 = vpop.f32.mrf.mxu2 }
 0x56e   : > { %v1621_v58 = vadd.f32 %v1582_v49, %v4394_v32  ;;  %v1697_v32 = vmul.f32 -11.696334, %v1693_v9 }
 0x570   : > { %v1649_v1 = vadd.f32 %v1638_v42, %v1621_v58  ;;  %v1700_v21 = vrot.slane %v1697_v32, 4 }
 0x575   : > { %v1585_v11 = vpop.f32.mrf.mxu2 }
 0x576   : > { %v1623_v59 = vadd.f32 %v1585_v11, %v4397_v34 }
 0x578   : > { %v1651_v62 = vadd.f32 %v4460_v61, %v1623_v59 }
 0x57a   : > { %1668 = vmatpush.msra.mxu0 %v1651_v62 }
 0x57c   : > { %1669 = vmatpush.msra.mxu0 %v1649_v1 }
 0x57e   : > { %1670 = vmatpush.msra.mxu0 %v1647_v2 }
 0x580   : > { %1671 = vmatpush.msra.mxu0 %v1645_v20 }
 0x581   : > { %3333 = vmatmul.msk.f32.vlgmr.msra.gmra.mxu0 %vm613_vm1, %v4485_v45 }
 0x5fe   : > { %v1673_v34 = vpop.f32.mrf.mxu0 }
 0x5ff   : > { %v1696_v14 = vmul.f32 -11.696334, %v1673_v34 }
 0x601   : > { %v1701_v30 = vsel %vm1249_vm3, %v1696_v14, %v1700_v21 }
 0x602   : > { %v4498_v61 = vadd.f32 %v1701_v30, %v4264_v24 }
 0x604   : > { %v1704_v28 = vmul.f32 0.32416117, %v4498_v61 }
 0x606   : > { %1706 = vst [vmem:[#allocation1] ss:$2 sm:$0xff] %v1704_v28 }
 0x60d   : > { %v1707_v12 = vld.sshfl [vmem:[#allocation1] sm:$0xff pattern:$0x75316420]  ;;  %v1708_v19 = vld.sshfl [vmem:[#allocation1 + $0x8] sm:$0xff pattern:$0x75316420] }
 0x60e   : > { %3335 = vmatpush.msk.msrb.mxu0 %vm1249_vm3, %v1707_v12  ;;  %3340 = vmatpush.msk.msrb.mxu1 %vm1249_vm3, %v1708_v19 }
 0x60f   : > { %3336 = vmatmul.msk.f32.vlgmr.msrb.gmra.mxu0 %vm1236_vm4, %v4309_v54  ;;  %3341 = vmatmul.msk.f32.vlgmr.msrb.gmra.mxu1 %vm1236_vm4, %v4309_v54 }
 0x617   : > { %3337 = vmatmul.msk.f32.gmra.mxu0 %vm1236_vm4, %v4318_v55  ;;  %3342 = vmatmul.msk.f32.gmra.mxu1 %vm1236_vm4, %v4318_v55 }
 0x61f   : > { %3338 = vmatmul.msk.f32.gmra.mxu0 %vm1236_vm4, %v4325_v56  ;;  %3343 = vmatmul.msk.f32.gmra.mxu1 %vm1236_vm4, %v4325_v56 }
 0x627   : > { %3339 = vmatmul.msk.f32.gmra.mxu0 %vm1236_vm4, %v4332_v57  ;;  %3344 = vmatmul.msk.f32.gmra.mxu1 %vm1236_vm4, %v4332_v57 }
 0x68c   : > { %v4519_v24 = vpop.f32.mrf.mxu0  ;;  %v4521_v54 = vpop.f32.mrf.mxu1 }
 0x694   : > { %v4523_v22 = vpop.f32.mrf.mxu0  ;;  %v4525_v23 = vpop.f32.mrf.mxu1 }
 0x69c   : > { %v4527_v55 = vpop.f32.mrf.mxu0  ;;  %v4529_v25 = vpop.f32.mrf.mxu1 }
 0x6a4   : > { %v4531_v27 = vpop.f32.mrf.mxu0  ;;  %v4533_v56 = vpop.f32.mrf.mxu1 }
 0x6a5   : > { %1783 = vmatpush.msra.mxu2 %v4531_v27  ;;  %1812 = vmatpush.msra.mxu3 %v4533_v56 }
 0x6a7   : > { %1784 = vmatpush.msra.mxu2 %v4527_v55  ;;  %1813 = vmatpush.msra.mxu3 %v4529_v25 }
 0x6a9   : > { %1785 = vmatpush.msra.mxu2 %v4523_v22  ;;  %1814 = vmatpush.msra.mxu3 %v4525_v23 }
 0x6ab   : > { %1786 = vmatpush.msra.mxu2 %v4519_v24  ;;  %1815 = vmatpush.msra.mxu3 %v4521_v54 }
 0x6ac   : > { %3345 = vmatmul.msk.f32.vlgmr.msra.gmra.mxu2 %vm613_vm1, %v4271_v41  ;;  %3349 = vmatmul.msk.f32.vlgmr.msra.gmra.mxu3 %vm613_vm1, %v4271_v41 }
 0x6b4   : > { %3346 = vmatmul.msk.f32.gmra.mxu2 %vm613_vm1, %v4285_v48  ;;  %3350 = vmatmul.msk.f32.gmra.mxu3 %vm613_vm1, %v4285_v48 }
 0x6bc   : > { %3347 = vmatmul.msk.f32.gmra.mxu2 %vm613_vm1, %v4294_v18  ;;  %3351 = vmatmul.msk.f32.gmra.mxu3 %vm613_vm1, %v4294_v18  ;;  %v1835_v18 = vpop.permute.xlu1 %1834 }
 0x6c4   : > { %3348 = vmatmul.msk.f32.gmra.mxu2 %vm613_vm1, %v4300_v53  ;;  %3352 = vmatmul.msk.f32.gmra.mxu3 %vm613_vm1, %v4300_v53  ;;  %v1831_v53 = vpop.permute.xlu1 %1830 }
 0x72f   : > { %v1788_v57 = vpop.f32.mrf.mxu2  ;;  %v1817_v41 = vpop.f32.mrf.mxu3 }
 0x737   : > { %v1791_v29 = vpop.f32.mrf.mxu2  ;;  %v1820_v31 = vpop.f32.mrf.mxu3 }
 0x73f   : > { %v1794_v33 = vpop.f32.mrf.mxu2  ;;  %v1823_v26 = vpop.f32.mrf.mxu3 }
 0x747   : > { %v1797_v35 = vpop.f32.mrf.mxu2  ;;  %v1826_v48 = vpop.f32.mrf.mxu3 }
 0x748   : > { %1849 = vmatpush.msra.mxu0 %v1797_v35  ;;  %1872 = vmatpush.msra.mxu1 %v1826_v48 }
 0x74a   : > { %1850 = vmatpush.msra.mxu0 %v1794_v33  ;;  %1873 = vmatpush.msra.mxu1 %v1823_v26 }
 0x74c   : > { %1851 = vmatpush.msra.mxu0 %v1791_v29  ;;  %1874 = vmatpush.msra.mxu1 %v1820_v31 }
 0x74e   : > { %1852 = vmatpush.msra.mxu0 %v1788_v57  ;;  %1875 = vmatpush.msra.mxu1 %v1817_v41 }
 0x74f   : > { %3353 = vmatmul.msk.f32.vlgmr.msra.gmra.mxu0 %vm613_vm1, %v4341_v5  ;;  %3355 = vmatmul.msk.f32.vlgmr.msra.gmra.mxu1 %vm613_vm1, %v4341_v5 }
 0x757   : > { %3354 = vmatmul.msk.f32.gmra.mxu0 %vm613_vm1, %v4349_v13  ;;  %3356 = vmatmul.msk.f32.gmra.mxu1 %vm613_vm1, %v4349_v13 }
 0x7cc   : > { %v1854_v37 = vpop.f32.mrf.mxu0  ;;  %v1877_v38 = vpop.f32.mrf.mxu1 }
 0x7cd   : > { %v1855_v39 = vadd.f32 %v1854_v37, %v1831_v53  ;;  %v1878_v43 = vadd.f32 %v1877_v38, %v1831_v53 }
 0x7cf   : > { %v1883_v42 = vrot.slane %v1855_v39, 4  ;;  %v1889_v15 = vrot.slane %v1878_v43, 4 }
 0x7d1   : > { %v1884_v16 = vmax.f32 %v1855_v39, %v1883_v42  ;;  %v1890_v44 = vmax.f32 %v1878_v43, %v1889_v15 }
 0x7d3   : > { %v1885_v8 = vrot.slane %v1884_v16, 2  ;;  %v1891_v10 = vrot.slane %v1890_v44, 2 }
 0x7d4   : > { %v1857_v40 = vpop.f32.mrf.mxu0  ;;  %v1880_v46 = vpop.f32.mrf.mxu1 }
 0x7d5   : > { %v1886_v50 = vmax.f32 %v1884_v16, %v1885_v8  ;;  %v1892_v47 = vmax.f32 %v1890_v44, %v1891_v10  ;;  %v1858_v51 = vadd.f32 %v1857_v40, %v1835_v18  ;;  %v1881_v17 = vadd.f32 %v1880_v46, %v1835_v18 }
 0x7d7   : > { %v1887_v52 = vrot.slane %v1886_v50, 1  ;;  %v1893_v7 = vrot.slane %v1892_v47, 1  ;;  %v1943_v36 = vrot.slane %v1858_v51, 4  ;;  %v1949_v49 = vrot.slane %v1881_v17, 4 }
 0x7d9   : > { %v1888_v11 = vmax.f32 %v1886_v50, %v1887_v52  ;;  %v1894_v58 = vmax.f32 %v1892_v47, %v1893_v7  ;;  %v1944_v59 = vmax.f32 %v1858_v51, %v1943_v36  ;;  %v1950_v60 = vmax.f32 %v1881_v17, %v1949_v49 }
 0x7db   : > { %v1895_v62 = vsub.f32 %v1855_v39, %v1888_v11  ;;  %v1896_v63 = vsub.f32 %v1878_v43, %v1894_v58  ;;  %v1945_v1 = vrot.slane %v1944_v59, 2  ;;  %v1951_v2 = vrot.slane %v1950_v60, 2 }
 0x7dd   : > { %v1897_v20 = vmul.f32 1.442695, %v1895_v62  ;;  %v1899_v9 = vmul.f32 1.442695, %v1896_v63  ;;  %v1946_v32 = vmax.f32 %v1944_v59, %v1945_v1  ;;  %v1952_v21 = vmax.f32 %v1950_v60, %v1951_v2 }
 0x7df   : > { %3596 = vpow2.f32 %v1897_v20  ;;  %v1947_v34 = vrot.slane %v1946_v32, 1  ;;  %v1953_v14 = vrot.slane %v1952_v21, 1 }
 0x7e0   : > { %3598 = vpow2.f32 %v1899_v9 }
 0x7e1   : > { %v1948_v30 = vmax.f32 %v1946_v32, %v1947_v34  ;;  %v1954_v28 = vmax.f32 %v1952_v21, %v1953_v14 }
 0x7e3   : > { %v1955_v12 = vsub.f32 %v1858_v51, %v1948_v30  ;;  %v1956_v19 = vsub.f32 %v1881_v17, %v1954_v28 }
 0x7e5   : > { %v4567_v57 = vpop.eup %3596  ;;  %v1957_v41 = vmul.f32 1.442695, %v1955_v12  ;;  %v1959_v29 = vmul.f32 1.442695, %v1956_v19 }
 0x7e6   : > { %v4569_v31 = vpop.eup %3598  ;;  %v1901_v33 = vrot.slane %v4567_v57, 4 }
 0x7e7   : > { %v1907_v26 = vrot.slane %v4569_v31, 4  ;;  %3600 = vpow2.f32 %v1957_v41 }
 0x7e8   : > { %v1902_v35 = vadd.f32 %v4567_v57, %v1901_v33  ;;  %3602 = vpow2.f32 %v1959_v29 }
 0x7e9   : > { %v1908_v48 = vadd.f32 %v4569_v31, %v1907_v26 }
 0x7ea   : > { %v1903_v18 = vrot.slane %v1902_v35, 2 }
 0x7eb   : > { %v1909_v53 = vrot.slane %v1908_v48, 2 }
 0x7ec   : > { %v1904_v37 = vadd.f32 %v1903_v18, %v1902_v35 }
 0x7ed   : > { %v4575_v38 = vpop.eup %3600  ;;  %v1910_v39 = vadd.f32 %v1909_v53, %v1908_v48 }
 0x7ee   : > { %v4577_v43 = vpop.eup %3602  ;;  %v1961_v42 = vrot.slane %v4575_v38, 4  ;;  %v1905_v15 = vrot.slane %v1904_v37, 1 }
 0x7ef   : > { %v1967_v16 = vrot.slane %v4577_v43, 4  ;;  %v1911_v44 = vrot.slane %v1910_v39, 1 }
 0x7f0   : > { %v1962_v8 = vadd.f32 %v4575_v38, %v1961_v42  ;;  %v1906_v10 = vadd.f32 %v1905_v15, %v1904_v37 }
 0x7f1   : > { %v1968_v40 = vadd.f32 %v4577_v43, %v1967_v16  ;;  %v1912_v46 = vadd.f32 %v1911_v44, %v1910_v39  ;;  %v4679_v44 = vld [vmem:[%s4995_s4 + $0x18] sm:$0xff] }
 0x7f2   : > { %v1963_v50 = vrot.slane %v1962_v8, 2  ;;  %3604 = vrcp.f32 %v1906_v10  ;;  %v1922_v63 = vand.u32 2147483647, %v1906_v10  ;;  %vm1918_vm10 = vweird.f32 %v1906_v10 }
 0x7f3   : > { %v1969_v47 = vrot.slane %v1968_v40, 2  ;;  %3606 = vrcp.f32 %v1912_v46  ;;  %v1924_v34 = vand.u32 2147483648, %v1906_v10  ;;  %vm1933_vm12 = vweird.f32 %v1912_v46 }
 0x7f4   : > { %v1964_v51 = vadd.f32 %v1963_v50, %v1962_v8  ;;  %vm4583_vm11 = vcmp.eq.f32.partialorder %v1922_v63, 8.507059e+37  ;;  %v1937_v28 = vand.u32 2147483647, %v1912_v46  ;;  %v1939_v41 = vand.u32 2147483648, %v1912_v46 }
 0x7f5   : > { %v1970_v17 = vadd.f32 %v1969_v47, %v1968_v40  ;;  %v1925_v42 = vor.u32 1.1754944e-38, %v1924_v34 }
 0x7f6   : > { %v1965_v52 = vrot.slane %v1964_v51, 1  ;;  %vm4599_vm8 = vcmp.eq.f32.partialorder %v1937_v28, 8.507059e+37 }
 0x7f7   : > { %v1971_v7 = vrot.slane %v1970_v17, 1 }
 0x7f8   : > { %v3605_v36 = vpop.eup %3604  ;;  %v1966_v49 = vadd.f32 %v1965_v52, %v1964_v51  ;;  %v1940_v51 = vor.u32 1.1754944e-38, %v1939_v41 }
 0x7f9   : > { %v3607_v11 = vpop.eup %3606  ;;  %v1972_v58 = vadd.f32 %v1971_v7, %v1970_v17  ;;  %v1914_v59 = vmul.f32 %v3605_v36, %v1906_v10  ;;  %vm1919_vm13 = vweird.f32 %v3605_v36 }
 0x7fa   : > { %3608 = vrcp.f32 %v1966_v49  ;;  %v1929_v62 = vmul.f32 %v3607_v11, %v1912_v46  ;;  %v1984_v29 = vand.u32 2147483648, %v1966_v49  ;;  %vm1934_vm15 = vweird.f32 %v3607_v11  ;;  %vm4588_vm5 = vmor %vm1918_vm10, %vm1919_vm13 }
 0x7fb   : > { %3610 = vrcp.f32 %v1972_v58  ;;  %v1915_v60 = vsub.f32 1.0, %v1914_v59  ;;  %v1982_v48 = vand.u32 2147483647, %v1966_v49  ;;  %v1999_v18 = vand.u32 2147483648, %v1972_v58  ;;  %vm4595_vm7 = vmor %vm1933_vm12, %vm1934_vm15 }
 0x7fc   : > { %v1930_v1 = vsub.f32 1.0, %v1929_v62  ;;  %v1997_v37 = vand.u32 2147483647, %v1972_v58  ;;  %vm1978_vm6 = vweird.f32 %v1966_v49  ;;  %v1985_v10 = vor.u32 1.1754944e-38, %v1984_v29 }
 0x7fd   : > { %v1916_v2 = vmul.f32 %v3605_v36, %v1915_v60  ;;  %vm1993_vm10 = vweird.f32 %v1972_v58  ;;  %vm1983_vm13 = vcmp.eq.f32.partialorder %v1982_v48, 8.507059e+37  ;;  %v2000_v46 = vor.u32 1.1754944e-38, %v1999_v18 }
 0x7fe   : > { %v1931_v9 = vmul.f32 %v3607_v11, %v1930_v1  ;;  %vm1998_vm12 = vcmp.eq.f32.partialorder %v1997_v37, 8.507059e+37  ;;  %v2079_v1 = vpop.permute.xlu1 %2078 }
 0x7ff   : > { %v1917_v19 = vadd.f32 %v3605_v36, %v1916_v2  ;;  %v2083_v2 = vpop.permute.xlu0 %2082 }
 0x800   : > { %v3609_v20 = vpop.eup %3608  ;;  %v1932_v26 = vadd.f32 %v3607_v11, %v1931_v9 }
 0x801   : > { %v3611_v32 = vpop.eup %3610  ;;  %v1974_v21 = vmul.f32 %v3609_v20, %v1966_v49  ;;  %vm1979_vm0 = vweird.f32 %v3609_v20  ;;  %v1921_v16 = vsel %vm4588_vm5, %v3605_v36, %v1917_v19 }
 0x802   : > { %v1989_v14 = vmul.f32 %v3611_v32, %v1972_v58  ;;  %vm1994_vm2 = vweird.f32 %v3611_v32  ;;  %vm1980_vm9 = vmor %vm1978_vm6, %vm1979_vm0  ;;  %v1936_v50 = vsel %vm4595_vm7, %v3607_v11, %v1932_v26  ;;  %v1926_v7 = vsel %vm4583_vm11, %v1925_v42, %v1921_v16  ;;  %v4670_v16 = vld [vmem:[%s4995_s4 + $0x10] sm:$0xff] }
 0x803   : > { %v1975_v12 = vsub.f32 1.0, %v1974_v21  ;;  %vm1995_vm5 = vmor %vm1993_vm10, %vm1994_vm2  ;;  %v1941_v58 = vsel %vm4599_vm8, %v1940_v51, %v1936_v50  ;;  %v1927_v59 = vmul.f32 %v4567_v57, %v1926_v7  ;;  %v4715_v7 = vld [vmem:[#allocation10 + $0x8] sm:$0xff] }
 0x804   : > { %v1990_v33 = vsub.f32 1.0, %v1989_v14  ;;  %v1942_v60 = vmul.f32 %v4569_v31, %v1941_v58 }
 0x805   : > { %v1976_v35 = vmul.f32 %v3609_v20, %v1975_v12 }
 0x806   : > { %v1991_v53 = vmul.f32 %v3611_v32, %v1990_v33  ;;  %v2075_v33 = vpop.permute.xlu1 %2074 }
 0x807   : > { %v1977_v15 = vadd.f32 %v3609_v20, %v1976_v35 }
 0x808   : > { %v1992_v40 = vadd.f32 %v3611_v32, %v1991_v53 }
 0x809   : > { %v1981_v47 = vsel %vm1980_vm9, %v3609_v20, %v1977_v15 }
 0x80a   : > { %v1986_v17 = vsel %vm1983_vm13, %v1985_v10, %v1981_v47  ;;  %v1996_v52 = vsel %vm1995_vm5, %v3611_v32, %v1992_v40 }
 0x80b   : > { %v1987_v36 = vmul.f32 %v4575_v38, %v1986_v17  ;;  %v2001_v49 = vsel %vm1998_vm12, %v2000_v46, %v1996_v52  ;;  %v4709_v52 = vld [vmem:[#allocation10] sm:$0xff] }
 0x80c   : > { %v2002_v11 = vmul.f32 %v4577_v43, %v2001_v49  ;;  %v4727_v49 = vld [vmem:[#allocation10 + $0x18] sm:$0xff] }
 0x80d   : > { %2017 = vmatpush.msrb.mxu2 %v1987_v36  ;;  %v4721_v36 = vld [vmem:[#allocation10 + $0x10] sm:$0xff] }
 0x80e   : > { %2046 = vmatpush.msrb.mxu3 %v2002_v11 }
 0x80f   : > { %2018 = vmatpush.msrb.mxu2 %v1927_v59 }
 0x810   : > { %2047 = vmatpush.msrb.mxu3 %v1942_v60  ;;  %3357 = vmatmul.msk.f32.vlgmr.msrb.gmra.mxu2 %vm1546_vm14, %v4435_v3 }
 0x811   : > { %3361 = vmatmul.msk.f32.vlgmr.msrb.gmra.mxu3 %vm1546_vm14, %v4435_v3 }
 0x818   : > { %3358 = vmatmul.msk.f32.gmra.mxu2 %vm1546_vm14, %v4440_v4 }
 0x819   : > { %3362 = vmatmul.msk.f32.gmra.mxu3 %vm1546_vm14, %v4440_v4 }
 0x820   : > { %3359 = vmatmul.msk.f32.gmra.mxu2 %vm1546_vm14, %v4445_v6 }
 0x821   : > { %3363 = vmatmul.msk.f32.gmra.mxu3 %vm1546_vm14, %v4445_v6 }
 0x828   : > { %3360 = vmatmul.msk.f32.gmra.mxu2 %vm1546_vm14, %v4450_v0 }
 0x829   : > { %3364 = vmatmul.msk.f32.gmra.mxu3 %vm1546_vm14, %v4450_v0 }
 0x893   : > { %v2020_v57 = vpop.f32.mrf.mxu2 }
 0x894   : > { %v2049_v31 = vpop.f32.mrf.mxu3  ;;  %v2061_v41 = vadd.f32 %v2020_v57, %v4519_v24 }
 0x89b   : > { %v2023_v38 = vpop.f32.mrf.mxu2 }
 0x89c   : > { %v2052_v43 = vpop.f32.mrf.mxu3  ;;  %v2063_v30 = vadd.f32 %v2023_v38, %v4523_v22 }
 0x89d   : > { %v2064_v12 = vadd.f32 %v2052_v43, %v4525_v23 }
 0x89f   : > { %v2088_v35 = vadd.f32 %v2075_v33, %v2064_v12 }
 0x8a3   : > { %v2026_v62 = vpop.f32.mrf.mxu2 }
 0x8a4   : > { %v2055_v63 = vpop.f32.mrf.mxu3  ;;  %v2065_v9 = vadd.f32 %v2026_v62, %v4527_v55  ;;  %v2062_v55 = vadd.f32 %v2049_v31, %v4521_v54 }
 0x8a5   : > { %v2066_v34 = vadd.f32 %v2055_v63, %v4529_v25  ;;  %v2071_v25 = vpop.permute.xlu0 %2070 }
 0x8a6   : > { %v2089_v29 = vadd.f32 %v2079_v1, %v2065_v9  ;;  %v2086_v22 = vadd.f32 %v2071_v25, %v2062_v55 }
 0x8a7   : > { %v2090_v26 = vadd.f32 %v2079_v1, %v2066_v34 }
 0x8ab   : > { %v2029_v20 = vpop.f32.mrf.mxu2 }
 0x8ac   : > { %v2067_v32 = vadd.f32 %v2029_v20, %v4531_v27  ;;  %v2058_v21 = vpop.f32.mrf.mxu3  ;;  %v2087_v27 = vadd.f32 %v2075_v33, %v2063_v30 }
 0x8ad   : > { %v2068_v14 = vadd.f32 %v2058_v21, %v4533_v56  ;;  %v2085_v56 = vadd.f32 %v2071_v25, %v2061_v41  ;;  %v2268_v62 = vpop.permute.xlu0 %2267 }
 0x8ae   : > { %v2091_v28 = vadd.f32 %v2083_v2, %v2067_v32 }
 0x8af   : > { %v2092_v19 = vadd.f32 %v2083_v2, %v2068_v14  ;;  %v2272_v14 = vpop.permute.xlu1 %2271 }
 0x8b0   : > { %2105 = vmatpush.msrb.mxu0 %v2091_v28 }
 0x8b1   : > { %2125 = vmatpush.msrb.mxu1 %v2092_v19 }
 0x8b2   : > { %2106 = vmatpush.msrb.mxu0 %v2089_v29 }
 0x8b3   : > { %2126 = vmatpush.msrb.mxu1 %v2090_v26 }
 0x8b4   : > { %2107 = vmatpush.msrb.mxu0 %v2087_v27 }
 0x8b5   : > { %2127 = vmatpush.msrb.mxu1 %v2088_v35 }
 0x8b6   : > { %2108 = vmatpush.msrb.mxu0 %v2085_v56 }
 0x8b7   : > { %2128 = vmatpush.msrb.mxu1 %v2086_v22  ;;  %3365 = vmatmul.msk.f32.vlgmr.msrb.gmra.mxu0 %vm613_vm1, %v4485_v45 }
 0x8b8   : > { %3366 = vmatmul.msk.f32.vlgmr.msrb.gmra.mxu1 %vm613_vm1, %v4485_v45  ;;  %v4652_v45 = vld [vmem:[%s4995_s4] sm:$0xff] }
 0x934   : > { %v2110_v24 = vpop.f32.mrf.mxu0 }
 0x935   : > { %v2130_v54 = vpop.f32.mrf.mxu1  ;;  %v2133_v48 = vmul.f32 -1.9859492, %v2110_v24 }
 0x936   : > { %v2134_v23 = vmul.f32 -1.9859492, %v2130_v54 }
 0x938   : > { %v2137_v18 = vrot.slane %v2134_v23, 4 }
 0x93a   : > { %v2138_v53 = vsel %vm1249_vm3, %v2133_v48, %v2137_v18 }
 0x93b   : > { %v4644_v37 = vadd.f32 %v2138_v53, %v4498_v61  ;;  %v4661_v61 = vld [vmem:[%s4995_s4 + $0x8] sm:$0xff] }
 0x93d   : > { %v2141_v39 = vmul.f32 0.73141104, %v4644_v37 }
 0x93f   : > { %2143 = vst [vmem:[#allocation1] ss:$2 sm:$0xff] %v2141_v39 }
 0x946   : > { %v2144_v42 = vld.sshfl [vmem:[#allocation1] sm:$0xff pattern:$0x75316420]  ;;  %v2145_v15 = vld.sshfl [vmem:[#allocation1 + $0x8] sm:$0xff pattern:$0x75316420] }
 0x947   : > { %3367 = vmatpush.msk.msra.mxu0 %vm1249_vm3, %v2144_v42  ;;  %3372 = vmatpush.msk.msra.mxu1 %vm1249_vm3, %v2145_v15 }
 0x948   : > { %3368 = vmatmul.msk.f32.vlgmr.msra.gmra.mxu0 %vm1236_vm4, %v4652_v45  ;;  %3373 = vmatmul.msk.f32.vlgmr.msra.gmra.mxu1 %vm1236_vm4, %v4652_v45 }
 0x950   : > { %3369 = vmatmul.msk.f32.gmra.mxu0 %vm1236_vm4, %v4661_v61  ;;  %3374 = vmatmul.msk.f32.gmra.mxu1 %vm1236_vm4, %v4661_v61 }
 0x958   : > { %3370 = vmatmul.msk.f32.gmra.mxu0 %vm1236_vm4, %v4670_v16  ;;  %3375 = vmatmul.msk.f32.gmra.mxu1 %vm1236_vm4, %v4670_v16 }
 0x960   : > { %3371 = vmatmul.msk.f32.gmra.mxu0 %vm1236_vm4, %v4679_v44  ;;  %3376 = vmatmul.msk.f32.gmra.mxu1 %vm1236_vm4, %v4679_v44 }
 0x9c5   : > { %v4685_v8 = vpop.f32.mrf.mxu0  ;;  %v4687_v10 = vpop.f32.mrf.mxu1 }
 0x9cd   : > { %v4689_v40 = vpop.f32.mrf.mxu0  ;;  %v4691_v50 = vpop.f32.mrf.mxu1 }
 0x9d5   : > { %v4693_v47 = vpop.f32.mrf.mxu0  ;;  %v4695_v46 = vpop.f32.mrf.mxu1 }
 0x9dd   : > { %v4697_v51 = vpop.f32.mrf.mxu0  ;;  %v4699_v17 = vpop.f32.mrf.mxu1 }
 0x9de   : > { %2220 = vmatpush.msra.mxu2 %v4697_v51  ;;  %2249 = vmatpush.msra.mxu3 %v4699_v17 }
 0x9e0   : > { %2221 = vmatpush.msra.mxu2 %v4693_v47  ;;  %2250 = vmatpush.msra.mxu3 %v4695_v46 }
 0x9e2   : > { %2222 = vmatpush.msra.mxu2 %v4689_v40  ;;  %2251 = vmatpush.msra.mxu3 %v4691_v50 }
 0x9e4   : > { %2223 = vmatpush.msra.mxu2 %v4685_v8  ;;  %2252 = vmatpush.msra.mxu3 %v4687_v10 }
 0x9e5   : > { %3377 = vmatmul.msk.f32.vlgmr.msra.gmra.mxu2 %vm613_vm1, %v4709_v52  ;;  %3381 = vmatmul.msk.f32.vlgmr.msra.gmra.mxu3 %vm613_vm1, %v4709_v52 }
 0x9ed   : > { %3378 = vmatmul.msk.f32.gmra.mxu2 %vm613_vm1, %v4715_v7  ;;  %3382 = vmatmul.msk.f32.gmra.mxu3 %vm613_vm1, %v4715_v7 }
 0x9f5   : > { %3379 = vmatmul.msk.f32.gmra.mxu2 %vm613_vm1, %v4721_v36  ;;  %3383 = vmatmul.msk.f32.gmra.mxu3 %vm613_vm1, %v4721_v36 }
 0x9fd   : > { %3380 = vmatmul.msk.f32.gmra.mxu2 %vm613_vm1, %v4727_v49  ;;  %3384 = vmatmul.msk.f32.gmra.mxu3 %vm613_vm1, %v4727_v49 }
 0xa68   : > { %v2225_v58 = vpop.f32.mrf.mxu2  ;;  %v2254_v11 = vpop.f32.mrf.mxu3 }
 0xa70   : > { %v2228_v59 = vpop.f32.mrf.mxu2  ;;  %v2257_v60 = vpop.f32.mrf.mxu3 }
 0xa78   : > { %v2231_v57 = vpop.f32.mrf.mxu2  ;;  %v2260_v31 = vpop.f32.mrf.mxu3 }
 0xa80   : > { %v2234_v38 = vpop.f32.mrf.mxu2  ;;  %v2263_v43 = vpop.f32.mrf.mxu3 }
 0xa81   : > { %2286 = vmatpush.msrb.mxu0 %v2234_v38  ;;  %2309 = vmatpush.msrb.mxu1 %v2263_v43 }
 0xa83   : > { %2287 = vmatpush.msrb.mxu0 %v2231_v57  ;;  %2310 = vmatpush.msrb.mxu1 %v2260_v31 }
 0xa85   : > { %2288 = vmatpush.msrb.mxu0 %v2228_v59  ;;  %2311 = vmatpush.msrb.mxu1 %v2257_v60 }
 0xa87   : > { %2289 = vmatpush.msrb.mxu0 %v2225_v58  ;;  %2312 = vmatpush.msrb.mxu1 %v2254_v11 }
 0xa88   : > { %3385 = vmatmul.msk.f32.vlgmr.msrb.gmra.mxu0 %vm613_vm1, %v4341_v5  ;;  %3387 = vmatmul.msk.f32.vlgmr.msrb.gmra.mxu1 %vm613_vm1, %v4341_v5 }
 0xa90   : > { %3386 = vmatmul.msk.f32.gmra.mxu0 %vm613_vm1, %v4349_v13  ;;  %3388 = vmatmul.msk.f32.gmra.mxu1 %vm613_vm1, %v4349_v13 }
 0xb05   : > { %v2291_v63 = vpop.f32.mrf.mxu0  ;;  %v2314_v1 = vpop.f32.mrf.mxu1 }
 0xb06   : > { %v2292_v2 = vadd.f32 %v2291_v63, %v2268_v62  ;;  %v2315_v20 = vadd.f32 %v2314_v1, %v2268_v62 }
 0xb08   : > { %v2320_v9 = vrot.slane %v2292_v2, 4  ;;  %v2326_v32 = vrot.slane %v2315_v20, 4 }
 0xb0a   : > { %v2321_v21 = vmax.f32 %v2292_v2, %v2320_v9  ;;  %v2327_v34 = vmax.f32 %v2315_v20, %v2326_v32 }
 0xb0c   : > { %v2322_v30 = vrot.slane %v2321_v21, 2  ;;  %v2328_v28 = vrot.slane %v2327_v34, 2 }
 0xb0d   : > { %v2294_v12 = vpop.f32.mrf.mxu0  ;;  %v2317_v19 = vpop.f32.mrf.mxu1 }
 0xb0e   : > { %v2323_v41 = vmax.f32 %v2321_v21, %v2322_v30  ;;  %v2329_v29 = vmax.f32 %v2327_v34, %v2328_v28  ;;  %v2295_v33 = vadd.f32 %v2294_v12, %v2272_v14  ;;  %v2318_v55 = vadd.f32 %v2317_v19, %v2272_v14 }
 0xb10   : > { %v2324_v26 = vrot.slane %v2323_v41, 1  ;;  %v2330_v27 = vrot.slane %v2329_v29, 1  ;;  %v2380_v25 = vrot.slane %v2295_v33, 4  ;;  %v2386_v35 = vrot.slane %v2318_v55, 4 }
 0xb12   : > { %v2325_v56 = vmax.f32 %v2323_v41, %v2324_v26  ;;  %v2331_v22 = vmax.f32 %v2329_v29, %v2330_v27  ;;  %v2381_v24 = vmax.f32 %v2295_v33, %v2380_v25  ;;  %v2387_v54 = vmax.f32 %v2318_v55, %v2386_v35 }
 0xb14   : > { %v2332_v23 = vsub.f32 %v2292_v2, %v2325_v56  ;;  %v2333_v48 = vsub.f32 %v2315_v20, %v2331_v22  ;;  %v2382_v18 = vrot.slane %v2381_v24, 2  ;;  %v2388_v53 = vrot.slane %v2387_v54, 2 }
 0xb16   : > { %v2334_v39 = vmul.f32 1.442695, %v2332_v23  ;;  %v2336_v42 = vmul.f32 1.442695, %v2333_v48  ;;  %v2383_v15 = vmax.f32 %v2381_v24, %v2382_v18  ;;  %v2389_v58 = vmax.f32 %v2387_v54, %v2388_v53 }
 0xb18   : > { %3612 = vpow2.f32 %v2334_v39  ;;  %v2384_v11 = vrot.slane %v2383_v15, 1  ;;  %v2390_v59 = vrot.slane %v2389_v58, 1 }
 0xb19   : > { %3614 = vpow2.f32 %v2336_v42 }
 0xb1a   : > { %v2385_v60 = vmax.f32 %v2383_v15, %v2384_v11  ;;  %v2391_v57 = vmax.f32 %v2389_v58, %v2390_v59 }
 0xb1c   : > { %v2392_v31 = vsub.f32 %v2295_v33, %v2385_v60  ;;  %v2393_v38 = vsub.f32 %v2318_v55, %v2391_v57 }
 0xb1e   : > { %v4741_v43 = vpop.eup %3612  ;;  %v2394_v62 = vmul.f32 1.442695, %v2392_v31  ;;  %v2396_v63 = vmul.f32 1.442695, %v2393_v38 }
 0xb1f   : > { %v4743_v1 = vpop.eup %3614  ;;  %v2338_v2 = vrot.slane %v4741_v43, 4 }
 0xb20   : > { %v2344_v20 = vrot.slane %v4743_v1, 4  ;;  %3616 = vpow2.f32 %v2394_v62 }
 0xb21   : > { %v2339_v9 = vadd.f32 %v4741_v43, %v2338_v2  ;;  %3618 = vpow2.f32 %v2396_v63 }
 0xb22   : > { %v2345_v32 = vadd.f32 %v4743_v1, %v2344_v20 }
 0xb23   : > { %v2340_v21 = vrot.slane %v2339_v9, 2 }
 0xb24   : > { %v2346_v34 = vrot.slane %v2345_v32, 2 }
 0xb25   : > { %v2341_v14 = vadd.f32 %v2340_v21, %v2339_v9 }
 0xb26   : > { %v4749_v30 = vpop.eup %3616  ;;  %v2347_v28 = vadd.f32 %v2346_v34, %v2345_v32 }
 0xb27   : > { %v4751_v12 = vpop.eup %3618  ;;  %v2398_v19 = vrot.slane %v4749_v30, 4  ;;  %v2342_v41 = vrot.slane %v2341_v14, 1 }
 0xb28   : > { %v2404_v29 = vrot.slane %v4751_v12, 4  ;;  %v2348_v33 = vrot.slane %v2347_v28, 1 }
 0xb29   : > { %v2399_v55 = vadd.f32 %v4749_v30, %v2398_v19  ;;  %v2343_v26 = vadd.f32 %v2342_v41, %v2341_v14 }
 0xb2a   : > { %v2405_v27 = vadd.f32 %v4751_v12, %v2404_v29  ;;  %v2349_v25 = vadd.f32 %v2348_v33, %v2347_v28 }
 0xb2b   : > { %v2400_v35 = vrot.slane %v2399_v55, 2  ;;  %3620 = vrcp.f32 %v2343_v26  ;;  %v2359_v11 = vand.u32 2147483647, %v2343_v26  ;;  %vm2355_vm11 = vweird.f32 %v2343_v26 }
 0xb2c   : > { %v2406_v56 = vrot.slane %v2405_v27, 2  ;;  %3622 = vrcp.f32 %v2349_v25  ;;  %v2361_v63 = vand.u32 2147483648, %v2343_v26  ;;  %vm2370_vm0 = vweird.f32 %v2349_v25 }
 0xb2d   : > { %v2401_v22 = vadd.f32 %v2400_v35, %v2399_v55  ;;  %vm4757_vm15 = vcmp.eq.f32.partialorder %v2359_v11, 8.507059e+37  ;;  %v2374_v9 = vand.u32 2147483647, %v2349_v25  ;;  %v2376_v34 = vand.u32 2147483648, %v2349_v25  ;;  %v2512_v35 = vpop.permute.xlu0 %2511 }
 0xb2e   : > { %v2407_v24 = vadd.f32 %v2406_v56, %v2405_v27  ;;  %v2362_v56 = vor.u32 1.1754944e-38, %v2361_v63 }
 0xb2f   : > { %v2402_v54 = vrot.slane %v2401_v22, 1  ;;  %vm4773_vm5 = vcmp.eq.f32.partialorder %v2374_v9, 8.507059e+37 }
 0xb30   : > { %v2408_v23 = vrot.slane %v2407_v24, 1 }
 0xb31   : > { %v3621_v48 = vpop.eup %3620  ;;  %v2403_v18 = vadd.f32 %v2402_v54, %v2401_v22 }
 0xb32   : > { %v3623_v53 = vpop.eup %3622  ;;  %v2409_v39 = vadd.f32 %v2408_v23, %v2407_v24  ;;  %v2351_v42 = vmul.f32 %v3621_v48, %v2343_v26  ;;  %vm2356_vm2 = vweird.f32 %v3621_v48 }
 0xb33   : > { %3624 = vrcp.f32 %v2403_v18  ;;  %v2366_v58 = vmul.f32 %v3623_v53, %v2349_v25  ;;  %v2421_v14 = vand.u32 2147483648, %v2403_v18  ;;  %vm2371_vm6 = vweird.f32 %v3623_v53  ;;  %vm4762_vm9 = vmor %vm2355_vm11, %vm2356_vm2 }
 0xb34   : > { %3626 = vrcp.f32 %v2409_v39  ;;  %v2352_v15 = vsub.f32 1.0, %v2351_v42  ;;  %v2419_v29 = vand.u32 2147483647, %v2403_v18  ;;  %v2436_v33 = vand.u32 2147483648, %v2409_v39  ;;  %vm4769_vm13 = vmor %vm2370_vm0, %vm2371_vm6 }
 0xb35   : > { %v2367_v59 = vsub.f32 1.0, %v2366_v58  ;;  %v2434_v27 = vand.u32 2147483647, %v2409_v39  ;;  %vm2415_vm10 = vweird.f32 %v2403_v18  ;;  %v2422_v26 = vor.u32 1.1754944e-38, %v2421_v14 }
 0xb36   : > { %v2353_v60 = vmul.f32 %v3621_v48, %v2352_v15  ;;  %vm2430_vm11 = vweird.f32 %v2409_v39  ;;  %vm2420_vm2 = vcmp.eq.f32.partialorder %v2419_v29, 8.507059e+37  ;;  %v2437_v25 = vor.u32 1.1754944e-38, %v2436_v33 }
 0xb37   : > { %v2368_v31 = vmul.f32 %v3623_v53, %v2367_v59  ;;  %vm2435_vm0 = vcmp.eq.f32.partialorder %v2434_v27, 8.507059e+37 }
 0xb38   : > { %v2354_v21 = vadd.f32 %v3621_v48, %v2353_v60 }
 0xb39   : > { %v3625_v57 = vpop.eup %3624  ;;  %v2369_v19 = vadd.f32 %v3623_v53, %v2368_v31 }
 0xb3a   : > { %v3627_v38 = vpop.eup %3626  ;;  %v2411_v62 = vmul.f32 %v3625_v57, %v2403_v18  ;;  %vm2416_vm7 = vweird.f32 %v3625_v57  ;;  %v2358_v24 = vsel %vm4762_vm9, %v3621_v48, %v2354_v21  ;;  %v2377_v48 = vor.u32 1.1754944e-38, %v2376_v34 }
 0xb3b   : > { %v2426_v2 = vmul.f32 %v3627_v38, %v2409_v39  ;;  %vm2431_vm8 = vweird.f32 %v3627_v38  ;;  %vm2417_vm12 = vmor %vm2415_vm10, %vm2416_vm7  ;;  %v2373_v15 = vsel %vm4769_vm13, %v3623_v53, %v2369_v19  ;;  %v2363_v59 = vsel %vm4757_vm15, %v2362_v56, %v2358_v24 }
 0xb3c   : > { %v2412_v32 = vsub.f32 1.0, %v2411_v62  ;;  %vm2432_vm9 = vmor %vm2430_vm11, %vm2431_vm8  ;;  %v2378_v39 = vsel %vm4773_vm5, %v2377_v48, %v2373_v15 }
 0xb3d   : > { %v2427_v28 = vsub.f32 1.0, %v2426_v2  ;;  %v2379_v62 = vmul.f32 %v4743_v1, %v2378_v39 }
 0xb3e   : > { %v2413_v41 = vmul.f32 %v3625_v57, %v2412_v32 }
 0xb3f   : > { %v2428_v55 = vmul.f32 %v3627_v38, %v2427_v28 }
 0xb40   : > { %v2414_v22 = vadd.f32 %v3625_v57, %v2413_v41 }
 0xb41   : > { %v2429_v42 = vadd.f32 %v3627_v38, %v2428_v55 }
 0xb42   : > { %v2418_v18 = vsel %vm2417_vm12, %v3625_v57, %v2414_v22  ;;  %v2364_v57 = vmul.f32 %v4741_v43, %v2363_v59 }
 0xb43   : > { %v2423_v58 = vsel %vm2420_vm2, %v2422_v26, %v2418_v18  ;;  %v2433_v11 = vsel %vm2432_vm9, %v3627_v38, %v2429_v42  ;;  %v2520_v38 = vpop.permute.xlu1 %2519 }
 0xb44   : > { %v2424_v60 = vmul.f32 %v4749_v30, %v2423_v58  ;;  %v2438_v31 = vsel %vm2435_vm0, %v2437_v25, %v2433_v11 }
 0xb45   : > { %v2439_v53 = vmul.f32 %v4751_v12, %v2438_v31 }
 0xb46   : > { %2454 = vmatpush.msra.mxu0 %v2424_v60 }
 0xb47   : > { %2483 = vmatpush.msra.mxu1 %v2439_v53 }
 0xb48   : > { %2455 = vmatpush.msra.mxu0 %v2364_v57 }
 0xb49   : > { %2484 = vmatpush.msra.mxu1 %v2379_v62  ;;  %3389 = vmatmul.msk.f32.vlgmr.msra.gmra.mxu0 %vm1546_vm14, %v4435_v3 }
 0xb4a   : > { %3393 = vmatmul.msk.f32.vlgmr.msra.gmra.mxu1 %vm1546_vm14, %v4435_v3 }
 0xb4b   : > { %v2516_v20 = vpop.permute.xlu1 %2515 }
 0xb51   : > { %3390 = vmatmul.msk.f32.gmra.mxu0 %vm1546_vm14, %v4440_v4 }
 0xb52   : > { %3394 = vmatmul.msk.f32.gmra.mxu1 %vm1546_vm14, %v4440_v4 }
 0xb59   : > { %3391 = vmatmul.msk.f32.gmra.mxu0 %vm1546_vm14, %v4445_v6 }
 0xb5a   : > { %3395 = vmatmul.msk.f32.gmra.mxu1 %vm1546_vm14, %v4445_v6 }
 0xb61   : > { %3392 = vmatmul.msk.f32.gmra.mxu0 %vm1546_vm14, %v4450_v0 }
 0xb62   : > { %3396 = vmatmul.msk.f32.gmra.mxu1 %vm1546_vm14, %v4450_v0 }
 0xbc6   : > { %v2457_v43 = vpop.f32.mrf.mxu0 }
 0xbc7   : > { %v2486_v1 = vpop.f32.mrf.mxu1  ;;  %v2498_v55 = vadd.f32 %v2457_v43, %v4685_v8  ;;  %v4815_v8 = vld [vmem:[%s5002_s11] sm:$0xf] }
 0xbce   : > { %v2460_v30 = vpop.f32.mrf.mxu0 }
 0xbcf   : > { %v2489_v12 = vpop.f32.mrf.mxu1  ;;  %v2500_v19 = vadd.f32 %v2460_v30, %v4689_v40 }
 0xbd0   : > { %v2501_v29 = vadd.f32 %v2489_v12, %v4691_v50 }
 0xbd2   : > { %v2525_v22 = vadd.f32 %v2512_v35, %v2501_v29 }
 0xbd6   : > { %v2463_v63 = vpop.f32.mrf.mxu0 }
 0xbd7   : > { %v2492_v2 = vpop.f32.mrf.mxu1  ;;  %v2502_v32 = vadd.f32 %v2463_v63, %v4693_v47  ;;  %v2499_v47 = vadd.f32 %v2486_v1, %v4687_v10 }
 0xbd8   : > { %v2503_v14 = vadd.f32 %v2492_v2, %v4695_v46  ;;  %v2508_v46 = vpop.permute.xlu1 %2507  ;;  %v2709_v2 = vpop.permute.xlu0 %2708 }
 0xbd9   : > { %v2526_v27 = vadd.f32 %v2516_v20, %v2502_v32  ;;  %v2523_v40 = vadd.f32 %v2508_v46, %v2499_v47 }
 0xbda   : > { %v2527_v56 = vadd.f32 %v2516_v20, %v2503_v14 }
 0xbde   : > { %v2466_v9 = vpop.f32.mrf.mxu0 }
 0xbdf   : > { %v2504_v21 = vadd.f32 %v2466_v9, %v4697_v51  ;;  %v2495_v34 = vpop.f32.mrf.mxu1  ;;  %v2524_v51 = vadd.f32 %v2512_v35, %v2500_v19 }
 0xbe0   : > { %v2505_v28 = vadd.f32 %v2495_v34, %v4699_v17  ;;  %v2522_v17 = vadd.f32 %v2508_v46, %v2498_v55 }
 0xbe1   : > { %v2528_v41 = vadd.f32 %v2520_v38, %v2504_v21 }
 0xbe2   : > { %v2529_v33 = vadd.f32 %v2520_v38, %v2505_v28 }
 0xbe3   : > { %2542 = vmatpush.msrb.mxu2 %v2528_v41 }
 0xbe4   : > { %2562 = vmatpush.msrb.mxu3 %v2529_v33 }
 0xbe5   : > { %2543 = vmatpush.msrb.mxu2 %v2526_v27 }
 0xbe6   : > { %2563 = vmatpush.msrb.mxu3 %v2527_v56 }
 0xbe7   : > { %2544 = vmatpush.msrb.mxu2 %v2524_v51 }
 0xbe8   : > { %2564 = vmatpush.msrb.mxu3 %v2525_v22 }
 0xbe9   : > { %2545 = vmatpush.msrb.mxu2 %v2522_v17 }
 0xbea   : > { %2565 = vmatpush.msrb.mxu3 %v2523_v40  ;;  %3397 = vmatmul.msk.f32.vlgmr.msrb.gmra.mxu2 %vm613_vm1, %v4815_v8 }
 0xbeb   : > { %3398 = vmatmul.msk.f32.vlgmr.msrb.gmra.mxu3 %vm613_vm1, %v4815_v8 }
 0xc6d   : > { %v2547_v10 = vpop.f32.mrf.mxu2 }
 0xc6e   : > { %v2567_v50 = vpop.f32.mrf.mxu3  ;;  %v2570_v54 = vmul.f32 -0.9031908, %v2547_v10 }
 0xc6f   : > { %v2571_v24 = vmul.f32 -0.9031908, %v2567_v50 }
 0xc71   : > { %v2574_v23 = vrot.slane %v2571_v24, 4 }
 0xc73   : > { %v2575_v26 = vsel %vm1249_vm3, %v2570_v54, %v2574_v23 }
 0xc74   : > { %v4823_v42 = vadd.f32 %v2575_v26, %v4644_v37 }
 0xc76   : > { %v2578_v15 = vmul.f32 0.9995749, %v4823_v42 }
 0xc78   : > { %2580 = vst [vmem:[#allocation1] ss:$2 sm:$0xff] %v2578_v15 }
 0xc7f   : > { %v2581_v18 = vld.sshfl [vmem:[#allocation1] sm:$0xff pattern:$0x75316420]  ;;  %v2582_v25 = vld.sshfl [vmem:[#allocation1 + $0x8] sm:$0xff pattern:$0x75316420] }
 0xc80   : > { %3399 = vmatpush.msk.msra.mxu2 %vm1249_vm3, %v2581_v18  ;;  %3404 = vmatpush.msk.msra.mxu3 %vm1249_vm3, %v2582_v25 }
 0xc81   : > { %3400 = vmatmul.msk.f32.vlgmr.msra.gmra.mxu2 %vm1236_vm4, %v4652_v45  ;;  %3405 = vmatmul.msk.f32.vlgmr.msra.gmra.mxu3 %vm1236_vm4, %v4652_v45 }
 0xc89   : > { %3401 = vmatmul.msk.f32.gmra.mxu2 %vm1236_vm4, %v4661_v61  ;;  %3406 = vmatmul.msk.f32.gmra.mxu3 %vm1236_vm4, %v4661_v61 }
 0xc91   : > { %3402 = vmatmul.msk.f32.gmra.mxu2 %vm1236_vm4, %v4670_v16  ;;  %3407 = vmatmul.msk.f32.gmra.mxu3 %vm1236_vm4, %v4670_v16 }
 0xc99   : > { %3403 = vmatmul.msk.f32.gmra.mxu2 %vm1236_vm4, %v4679_v44  ;;  %3408 = vmatmul.msk.f32.gmra.mxu3 %vm1236_vm4, %v4679_v44 }
 0xd04   : > { %v4844_v37 = vpop.f32.mrf.mxu2  ;;  %v4846_v45 = vpop.f32.mrf.mxu3 }
 0xd0c   : > { %v4848_v48 = vpop.f32.mrf.mxu2  ;;  %v4850_v58 = vpop.f32.mrf.mxu3 }
 0xd14   : > { %v4852_v61 = vpop.f32.mrf.mxu2  ;;  %v4854_v11 = vpop.f32.mrf.mxu3 }
 0xd1c   : > { %v4856_v59 = vpop.f32.mrf.mxu2  ;;  %v4858_v16 = vpop.f32.mrf.mxu3 }
 0xd1d   : > { %2657 = vmatpush.msrb.mxu0 %v4856_v59  ;;  %2686 = vmatpush.msrb.mxu1 %v4858_v16 }
 0xd1f   : > { %2658 = vmatpush.msrb.mxu0 %v4852_v61  ;;  %2687 = vmatpush.msrb.mxu1 %v4854_v11 }
 0xd21   : > { %2659 = vmatpush.msrb.mxu0 %v4848_v48  ;;  %2688 = vmatpush.msrb.mxu1 %v4850_v58 }
 0xd23   : > { %2660 = vmatpush.msrb.mxu0 %v4844_v37  ;;  %2689 = vmatpush.msrb.mxu1 %v4846_v45 }
 0xd24   : > { %3409 = vmatmul.msk.f32.vlgmr.msrb.gmra.mxu0 %vm613_vm1, %v4709_v52  ;;  %3413 = vmatmul.msk.f32.vlgmr.msrb.gmra.mxu1 %vm613_vm1, %v4709_v52 }
 0xd2c   : > { %3410 = vmatmul.msk.f32.gmra.mxu0 %vm613_vm1, %v4715_v7  ;;  %3414 = vmatmul.msk.f32.gmra.mxu1 %vm613_vm1, %v4715_v7 }
 0xd34   : > { %3411 = vmatmul.msk.f32.gmra.mxu0 %vm613_vm1, %v4721_v36  ;;  %3415 = vmatmul.msk.f32.gmra.mxu1 %vm613_vm1, %v4721_v36  ;;  %v2705_v36 = vpop.permute.xlu1 %2704 }
 0xd3c   : > { %3412 = vmatmul.msk.f32.gmra.mxu0 %vm613_vm1, %v4727_v49  ;;  %3416 = vmatmul.msk.f32.gmra.mxu1 %vm613_vm1, %v4727_v49 }
 0xda1   : > { %v2662_v44 = vpop.f32.mrf.mxu0  ;;  %v2691_v52 = vpop.f32.mrf.mxu1 }
 0xda9   : > { %v2665_v60 = vpop.f32.mrf.mxu0  ;;  %v2694_v31 = vpop.f32.mrf.mxu1 }
 0xdb1   : > { %v2668_v39 = vpop.f32.mrf.mxu0  ;;  %v2697_v53 = vpop.f32.mrf.mxu1 }
 0xdb9   : > { %v2671_v57 = vpop.f32.mrf.mxu0  ;;  %v2700_v7 = vpop.f32.mrf.mxu1 }
 0xdba   : > { %2723 = vmatpush.msrb.mxu2 %v2671_v57  ;;  %2746 = vmatpush.msrb.mxu3 %v2700_v7 }
 0xdbc   : > { %2724 = vmatpush.msrb.mxu2 %v2668_v39  ;;  %2747 = vmatpush.msrb.mxu3 %v2697_v53 }
 0xdbe   : > { %2725 = vmatpush.msrb.mxu2 %v2665_v60  ;;  %2748 = vmatpush.msrb.mxu3 %v2694_v31 }
 0xdc0   : > { %2726 = vmatpush.msrb.mxu2 %v2662_v44  ;;  %2749 = vmatpush.msrb.mxu3 %v2691_v52 }
 0xdc1   : > { %3417 = vmatmul.msk.f32.vlgmr.msrb.gmra.mxu2 %vm613_vm1, %v4341_v5  ;;  %3419 = vmatmul.msk.f32.vlgmr.msrb.gmra.mxu3 %vm613_vm1, %v4341_v5 }
 0xdc9   : > { %3418 = vmatmul.msk.f32.gmra.mxu2 %vm613_vm1, %v4349_v13  ;;  %3420 = vmatmul.msk.f32.gmra.mxu3 %vm613_vm1, %v4349_v13 }
 0xe44   : > { %v2728_v49 = vpop.f32.mrf.mxu2  ;;  %v2751_v62 = vpop.f32.mrf.mxu3 }
 0xe45   : > { %v2729_v43 = vadd.f32 %v2728_v49, %v2705_v36  ;;  %v2752_v1 = vadd.f32 %v2751_v62, %v2705_v36 }
 0xe47   : > { %v2757_v30 = vrot.slane %v2729_v43, 4  ;;  %v2763_v12 = vrot.slane %v2752_v1, 4 }
 0xe49   : > { %v2758_v38 = vmax.f32 %v2729_v43, %v2757_v30  ;;  %v2764_v63 = vmax.f32 %v2752_v1, %v2763_v12 }
 0xe4b   : > { %v2759_v20 = vrot.slane %v2758_v38, 2  ;;  %v2765_v9 = vrot.slane %v2764_v63, 2 }
 0xe4c   : > { %v2731_v32 = vpop.f32.mrf.mxu2  ;;  %v2754_v5 = vpop.f32.mrf.mxu3 }
 0xe4d   : > { %v2760_v21 = vmax.f32 %v2758_v38, %v2759_v20  ;;  %v2766_v34 = vmax.f32 %v2764_v63, %v2765_v9  ;;  %v2732_v14 = vadd.f32 %v2731_v32, %v2709_v2  ;;  %v2755_v28 = vadd.f32 %v2754_v5, %v2709_v2 }
 0xe4f   : > { %v2761_v19 = vrot.slane %v2760_v21, 1  ;;  %v2767_v13 = vrot.slane %v2766_v34, 1  ;;  %v2817_v41 = vrot.slane %v2732_v14, 4  ;;  %v2823_v29 = vrot.slane %v2755_v28, 4 }
 0xe51   : > { %v2762_v33 = vmax.f32 %v2760_v21, %v2761_v19  ;;  %v2768_v55 = vmax.f32 %v2766_v34, %v2767_v13  ;;  %v2818_v27 = vmax.f32 %v2732_v14, %v2817_v41  ;;  %v2824_v35 = vmax.f32 %v2755_v28, %v2823_v29 }
 0xe53   : > { %v2769_v47 = vsub.f32 %v2729_v43, %v2762_v33  ;;  %v2770_v56 = vsub.f32 %v2752_v1, %v2768_v55  ;;  %v2819_v51 = vrot.slane %v2818_v27, 2  ;;  %v2825_v46 = vrot.slane %v2824_v35, 2 }
 0xe55   : > { %v2771_v22 = vmul.f32 1.442695, %v2769_v47  ;;  %v2773_v17 = vmul.f32 1.442695, %v2770_v56  ;;  %v2820_v40 = vmax.f32 %v2818_v27, %v2819_v51  ;;  %v2826_v10 = vmax.f32 %v2824_v35, %v2825_v46 }
 0xe57   : > { %3628 = vpow2.f32 %v2771_v22  ;;  %v2821_v50 = vrot.slane %v2820_v40, 1  ;;  %v2827_v24 = vrot.slane %v2826_v10, 1 }
 0xe58   : > { %3630 = vpow2.f32 %v2773_v17 }
 0xe59   : > { %v2822_v54 = vmax.f32 %v2820_v40, %v2821_v50  ;;  %v2828_v23 = vmax.f32 %v2826_v10, %v2827_v24 }
 0xe5b   : > { %v2829_v26 = vsub.f32 %v2732_v14, %v2822_v54  ;;  %v2830_v15 = vsub.f32 %v2755_v28, %v2828_v23 }
 0xe5d   : > { %v4892_v18 = vpop.eup %3628  ;;  %v2831_v25 = vmul.f32 1.442695, %v2829_v26  ;;  %v2833_v44 = vmul.f32 1.442695, %v2830_v15 }
 0xe5e   : > { %v4894_v52 = vpop.eup %3630  ;;  %v2775_v60 = vrot.slane %v4892_v18, 4 }
 0xe5f   : > { %v2781_v31 = vrot.slane %v4894_v52, 4  ;;  %3632 = vpow2.f32 %v2831_v25 }
 0xe60   : > { %v2776_v39 = vadd.f32 %v4892_v18, %v2775_v60  ;;  %3634 = vpow2.f32 %v2833_v44 }
 0xe61   : > { %v2782_v53 = vadd.f32 %v4894_v52, %v2781_v31 }
 0xe62   : > { %v2777_v57 = vrot.slane %v2776_v39, 2 }
 0xe63   : > { %v2783_v7 = vrot.slane %v2782_v53, 2 }
 0xe64   : > { %v2778_v36 = vadd.f32 %v2777_v57, %v2776_v39 }
 0xe65   : > { %v4900_v49 = vpop.eup %3632  ;;  %v2784_v62 = vadd.f32 %v2783_v7, %v2782_v53 }
 0xe66   : > { %v4902_v43 = vpop.eup %3634  ;;  %v2835_v1 = vrot.slane %v4900_v49, 4  ;;  %v2779_v30 = vrot.slane %v2778_v36, 1 }
 0xe67   : > { %v2841_v12 = vrot.slane %v4902_v43, 4  ;;  %v2785_v38 = vrot.slane %v2784_v62, 1 }
 0xe68   : > { %v2836_v63 = vadd.f32 %v4900_v49, %v2835_v1  ;;  %v2780_v2 = vadd.f32 %v2779_v30, %v2778_v36 }
 0xe69   : > { %v2842_v20 = vadd.f32 %v4902_v43, %v2841_v12  ;;  %v2786_v9 = vadd.f32 %v2785_v38, %v2784_v62 }
 0xe6a   : > { %v2837_v32 = vrot.slane %v2836_v63, 2  ;;  %3636 = vrcp.f32 %v2780_v2  ;;  %v2796_v35 = vand.u32 2147483647, %v2780_v2  ;;  %vm2792_vm15 = vweird.f32 %v2780_v2 }
 0xe6b   : > { %v2843_v5 = vrot.slane %v2842_v20, 2  ;;  %3638 = vrcp.f32 %v2786_v9  ;;  %v2798_v40 = vand.u32 2147483648, %v2780_v2  ;;  %vm2807_vm7 = vweird.f32 %v2786_v9 }
 0xe6c   : > { %v2838_v21 = vadd.f32 %v2837_v32, %v2836_v63  ;;  %vm4908_vm6 = vcmp.eq.f32.partialorder %v2796_v35, 8.507059e+37  ;;  %v2811_v24 = vand.u32 2147483647, %v2786_v9  ;;  %v2813_v26 = vand.u32 2147483648, %v2786_v9 }
 0xe6d   : > { %v2844_v34 = vadd.f32 %v2843_v5, %v2842_v20  ;;  %v2799_v36 = vor.u32 1.1754944e-38, %v2798_v40 }
 0xe6e   : > { %v2839_v14 = vrot.slane %v2838_v21, 1  ;;  %vm4924_vm9 = vcmp.eq.f32.partialorder %v2811_v24, 8.507059e+37  ;;  %v2814_v32 = vor.u32 1.1754944e-38, %v2813_v26 }
 0xe6f   : > { %v2845_v28 = vrot.slane %v2844_v34, 1 }
 0xe70   : > { %v3637_v19 = vpop.eup %3636  ;;  %v2840_v13 = vadd.f32 %v2839_v14, %v2838_v21 }
 0xe71   : > { %v3639_v41 = vpop.eup %3638  ;;  %v2846_v29 = vadd.f32 %v2845_v28, %v2844_v34  ;;  %v2788_v33 = vmul.f32 %v3637_v19, %v2780_v2  ;;  %vm2793_vm8 = vweird.f32 %v3637_v19 }
 0xe72   : > { %3640 = vrcp.f32 %v2840_v13  ;;  %v2803_v27 = vmul.f32 %v3639_v41, %v2786_v9  ;;  %v2858_v15 = vand.u32 2147483648, %v2840_v13  ;;  %vm2808_vm10 = vweird.f32 %v3639_v41  ;;  %vm4913_vm12 = vmor %vm2792_vm15, %vm2793_vm8 }
 0xe73   : > { %3642 = vrcp.f32 %v2846_v29  ;;  %v2789_v55 = vsub.f32 1.0, %v2788_v33  ;;  %v2856_v31 = vand.u32 2147483647, %v2840_v13  ;;  %v2873_v39 = vand.u32 2147483648, %v2846_v29  ;;  %vm4920_vm2 = vmor %vm2807_vm7, %vm2808_vm10 }
 0xe74   : > { %v2804_v47 = vsub.f32 1.0, %v2803_v27  ;;  %v2871_v57 = vand.u32 2147483647, %v2846_v29  ;;  %vm2852_vm11 = vweird.f32 %v2840_v13  ;;  %v2859_v38 = vor.u32 1.1754944e-38, %v2858_v15 }
 0xe75   : > { %v2790_v56 = vmul.f32 %v3637_v19, %v2789_v55  ;;  %vm2867_vm15 = vweird.f32 %v2846_v29  ;;  %vm2857_vm8 = vcmp.eq.f32.partialorder %v2856_v31, 8.507059e+37  ;;  %v2874_v9 = vor.u32 1.1754944e-38, %v2873_v39  ;;  %v2957_v55 = vpop.permute.xlu1 %2956 }
 0xe76   : > { %v2805_v46 = vmul.f32 %v3639_v41, %v2804_v47  ;;  %vm2872_vm7 = vcmp.eq.f32.partialorder %v2871_v57, 8.507059e+37 }
 0xe77   : > { %v2791_v23 = vadd.f32 %v3637_v19, %v2790_v56 }
 0xe78   : > { %v3641_v51 = vpop.eup %3640  ;;  %v2806_v44 = vadd.f32 %v3639_v41, %v2805_v46 }
 0xe79   : > { %v3643_v22 = vpop.eup %3642  ;;  %v2848_v17 = vmul.f32 %v3641_v51, %v2840_v13  ;;  %vm2853_vm13 = vweird.f32 %v3641_v51  ;;  %v2795_v1 = vsel %vm4913_vm12, %v3637_v19, %v2791_v23 }
 0xe7a   : > { %v2863_v10 = vmul.f32 %v3643_v22, %v2846_v29  ;;  %vm2868_vm5 = vweird.f32 %v3643_v22  ;;  %vm2854_vm0 = vmor %vm2852_vm11, %vm2853_vm13  ;;  %v2810_v2 = vsel %vm4920_vm2, %v3639_v41, %v2806_v44  ;;  %v2800_v34 = vsel %vm4908_vm6, %v2799_v36, %v2795_v1 }
 0xe7b   : > { %v2849_v54 = vsub.f32 1.0, %v2848_v17  ;;  %vm2869_vm12 = vmor %vm2867_vm15, %vm2868_vm5  ;;  %v2815_v19 = vsel %vm4924_vm9, %v2814_v32, %v2810_v2  ;;  %v2801_v41 = vmul.f32 %v4892_v18, %v2800_v34 }
 0xe7c   : > { %v2864_v25 = vsub.f32 1.0, %v2863_v10  ;;  %v2816_v29 = vmul.f32 %v4894_v52, %v2815_v19 }
 0xe7d   : > { %v2850_v60 = vmul.f32 %v3641_v51, %v2849_v54  ;;  %v2949_v50 = vpop.permute.xlu1 %2948 }
 0xe7e   : > { %v2865_v53 = vmul.f32 %v3643_v22, %v2864_v25 }
 0xe7f   : > { %v2851_v62 = vadd.f32 %v3641_v51, %v2850_v60  ;;  %v3016_v60 = vld [vmem:[#allocation15] sm:$0x7] }
 0xe80   : > { %v2866_v63 = vadd.f32 %v3643_v22, %v2865_v53 }
 0xe81   : > { %v2855_v20 = vsel %vm2854_vm0, %v3641_v51, %v2851_v62 }
 0xe82   : > { %v2860_v5 = vsel %vm2857_vm8, %v2859_v38, %v2855_v20  ;;  %v2870_v21 = vsel %vm2869_vm12, %v3643_v22, %v2866_v63 }
 0xe83   : > { %v2861_v14 = vmul.f32 %v4900_v49, %v2860_v5  ;;  %v2875_v28 = vsel %vm2872_vm7, %v2874_v9, %v2870_v21 }
 0xe84   : > { %v2876_v13 = vmul.f32 %v4902_v43, %v2875_v28 }
 0xe85   : > { %2891 = vmatpush.msra.mxu2 %v2861_v14 }
 0xe86   : > { %2920 = vmatpush.msra.mxu3 %v2876_v13 }
 0xe87   : > { %2892 = vmatpush.msra.mxu2 %v2801_v41 }
 0xe88   : > { %2921 = vmatpush.msra.mxu3 %v2816_v29  ;;  %3421 = vmatmul.msk.f32.vlgmr.msra.gmra.mxu2 %vm1546_vm14, %v4435_v3 }
 0xe89   : > { %3425 = vmatmul.msk.f32.vlgmr.msra.gmra.mxu3 %vm1546_vm14, %v4435_v3 }
 0xe90   : > { %3422 = vmatmul.msk.f32.gmra.mxu2 %vm1546_vm14, %v4440_v4 }
 0xe91   : > { %3426 = vmatmul.msk.f32.gmra.mxu3 %vm1546_vm14, %v4440_v4  ;;  %v2953_v4 = vpop.permute.xlu0 %2952 }
 0xe98   : > { %3423 = vmatmul.msk.f32.gmra.mxu2 %vm1546_vm14, %v4445_v6 }
 0xe99   : > { %3427 = vmatmul.msk.f32.gmra.mxu3 %vm1546_vm14, %v4445_v6 }
 0xea0   : > { %3424 = vmatmul.msk.f32.gmra.mxu2 %vm1546_vm14, %v4450_v0 }
 0xea1   : > { %3428 = vmatmul.msk.f32.gmra.mxu3 %vm1546_vm14, %v4450_v0 }
 0xf0b   : > { %v2894_v18 = vpop.f32.mrf.mxu2 }
 0xf0c   : > { %v2923_v3 = vpop.f32.mrf.mxu3  ;;  %v2935_v40 = vadd.f32 %v2894_v18, %v4844_v37 }
 0xf13   : > { %v2897_v52 = vpop.f32.mrf.mxu2 }
 0xf14   : > { %v2926_v49 = vpop.f32.mrf.mxu3  ;;  %v2937_v0 = vadd.f32 %v2897_v52, %v4848_v48 }
 0xf15   : > { %v2938_v22 = vadd.f32 %v2926_v49, %v4850_v58 }
 0xf17   : > { %v2962_v54 = vadd.f32 %v2949_v50, %v2938_v22 }
 0xf1b   : > { %v2900_v43 = vpop.f32.mrf.mxu2 }
 0xf1c   : > { %v2929_v33 = vpop.f32.mrf.mxu3  ;;  %v2939_v35 = vadd.f32 %v2900_v43, %v4852_v61  ;;  %v2936_v61 = vadd.f32 %v2923_v3, %v4846_v45 }
 0xf1d   : > { %v2940_v56 = vadd.f32 %v2929_v33, %v4854_v11  ;;  %v2945_v11 = vpop.permute.xlu0 %2944 }
 0xf1e   : > { %v2963_v10 = vadd.f32 %v2953_v4, %v2939_v35  ;;  %v2960_v48 = vadd.f32 %v2945_v11, %v2936_v61 }
 0xf1f   : > { %v2964_v24 = vadd.f32 %v2953_v4, %v2940_v56 }
 0xf23   : > { %v2903_v27 = vpop.f32.mrf.mxu2 }
 0xf24   : > { %v2941_v47 = vadd.f32 %v2903_v27, %v4856_v59  ;;  %v2932_v6 = vpop.f32.mrf.mxu3  ;;  %v2961_v59 = vadd.f32 %v2949_v50, %v2937_v0 }
 0xf25   : > { %v2942_v51 = vadd.f32 %v2932_v6, %v4858_v16  ;;  %v2959_v16 = vadd.f32 %v2945_v11, %v2935_v40 }
 0xf26   : > { %v2965_v46 = vadd.f32 %v2957_v55, %v2941_v47 }
 0xf27   : > { %v2966_v17 = vadd.f32 %v2957_v55, %v2942_v51 }
 0xf28   : > { %2979 = vmatpush.msra.mxu0 %v2965_v46 }
 0xf29   : > { %2999 = vmatpush.msra.mxu1 %v2966_v17 }
 0xf2a   : > { %2980 = vmatpush.msra.mxu0 %v2963_v10 }
 0xf2b   : > { %3000 = vmatpush.msra.mxu1 %v2964_v24 }
 0xf2c   : > { %2981 = vmatpush.msra.mxu0 %v2961_v59 }
 0xf2d   : > { %3001 = vmatpush.msra.mxu1 %v2962_v54 }
 0xf2e   : > { %2982 = vmatpush.msra.mxu0 %v2959_v16 }
 0xf2f   : > { %3002 = vmatpush.msra.mxu1 %v2960_v48  ;;  %3429 = vmatmul.msk.f32.vlgmr.msra.gmra.mxu0 %vm613_vm1, %v4815_v8 }
 0xf30   : > { %3430 = vmatmul.msk.f32.vlgmr.msra.gmra.mxu1 %vm613_vm1, %v4815_v8 }
 0xfac   : > { %v2984_v37 = vpop.f32.mrf.mxu0 }
 0xfad   : > { %v3004_v45 = vpop.f32.mrf.mxu1  ;;  %v3007_v23 = vmul.f32 -0.029167159, %v2984_v37 }
 0xfae   : > { %v3008_v58 = vmul.f32 -0.029167159, %v3004_v45 }
 0xfb0   : > { %v3011_v26 = vrot.slane %v3008_v58, 4 }
 0xfb2   : > { %v3012_v15 = vsel %vm1249_vm3, %v3007_v23, %v3011_v26 }
 0xfb3   : > { %v3014_v25 = vadd.f32 %v3012_v15, %v4823_v42 }
 0xfb5   : > { %v3015_v44 = vmul.f32 7.677543, %v3014_v25 }
 0xfb7   : > { %3018 = vst [vmem:[#allocation1] ss:$2 sm:$0xff] %v3015_v44 }
 0xfbe   : > { %v3019_v31 = vld.sshfl [vmem:[#allocation1] sm:$0xff pattern:$0x75316420]  ;;  %v3020_v39 = vld.sshfl [vmem:[#allocation1 + $0x8] sm:$0xff pattern:$0x75316420] }
 0xfbf   : > { %3431 = vmatpush.msk.msrb.mxu0 %vm1249_vm3, %v3019_v31  ;;  %3433 = vmatpush.msk.msrb.mxu1 %vm1249_vm3, %v3020_v39 }
 0xfc0   : > { %3434 = vmatmul.msk.f32.vlgmr.msrb.gmra.mxu1 %vm1236_vm4, %v3016_v60  ;;  %3432 = vmatmul.msk.f32.vlgmr.msrb.gmra.mxu0 %vm1236_vm4, %v3016_v60 }
0x103d   : > { %v3065_v8 = vpop.f32.mrf.mxu1  ;;  %v3045_v53 = vpop.f32.mrf.mxu0 }
0x103e   : > { %v3069_v57 = vmul.f32 0.5, %v3065_v8  ;;  %v3068_v7 = vmul.f32 0.5, %v3045_v53 }
0x1040   : > { %v3071_v36 = vadd.f32 0.5, %v3069_v57  ;;  %v3070_v42 = vadd.f32 0.5, %v3068_v7 }
0x1042   : > { %v3073_v62 = vmax.f32 %v3071_v36, 0.0  ;;  %v3072_v1 = vmax.f32 %v3070_v42, 0.0 }
0x1044   : > { %v3075_v30 = vmin.f32 %v3073_v62, 1.0  ;;  %v3074_v12 = vmin.f32 %v3072_v1, 1.0 }
0x1046   : > { %v3078_v38 = vrot.slane %v3075_v30, 4 }
0x1048   : > { %v3079_v63 = vsel %vm1249_vm3, %v3074_v12, %v3078_v38 }
0x1049   : > { %3081 = vst [vmem:[%s606_s13] sm:$0x77] %v3079_v63 }
0x104a PF: > { %p27_p3 = scmp.ge.s32.totalorder %s4155_s20, 4   ;;  %s5043_s25 = smov %s3965_s26 }
0x104b   : > { %s5044_s26 = smov %s3969_s27  ;;  %s5045_s27 = smov %s4166_s17 }
0x104c   : > { %s5046_s28 = smov %s4155_s20  ;;  %29 = sbr.rel (!%p27_p3) target bundleno = 12 (0xc), region = 147 }
0x1051   :  { %3103 = vsyncpa [#allocation3], 1 }
0x1052   :  { %3105 = vsyncpa [#allocation3 + $0x1], 1 }
0x1053   :  { %3106 = vsyncpa [#allocation5], 1 }
0x1054   :  { %3107 = vsyncpa [#allocation8], 1 }
0x1055   :  { %3108 = vsyncpa [#allocation11], 1 }
0x1056   :  { %3109 = vsyncpa [#allocation14], 1 }

</bundles_post_ra>
